<compile_context>
chip_gen: v7x
topology: tpu7x:2x2x1
jax: 0.10.0
libtpu: 0.0.40
codegen_flags: <defaults>
</compile_context>

<pallas_src>
import functools

import jax
import jax.numpy as jnp
from jax.experimental import pallas as pl
from jax.experimental.pallas import tpu as pltpu

EPS = 1e-5
LANE = 128


def _round_up(x, m):
    return (x + m - 1) // m * m


# ---------------------------------------------------------------------------
# Fused BasicBlock kernel: one batch element per grid step.
# ---------------------------------------------------------------------------
def _basic_block_kernel(x_ref, w1_ref, w2_ref, s1_ref, b1_ref, s2_ref, b2_ref,
                        res_ref, o_ref, y1p_ref, *, stride):
    Ho, Wo, planes = o_ref.shape
    Pc = y1p_ref.shape[-1]                      # lane-padded channels
    M = Ho * Wo
    cin = x_ref.shape[-1] if stride == 1 else x_ref.shape[-1] // 4

    # ---- conv1 (3x3, stride, pad=1): 9 taps concatenated along K -> 1 dot --
    taps = []
    for kh in range(3):
        for kw in range(3):
            if stride == 1:
                t = x_ref[pl.ds(kh, Ho), pl.ds(kw, Wo), :]
            else:
                # space-to-depth input: phase p = 2*(kh%2)+(kw%2) lives in
                # channel block [p*cin, (p+1)*cin); rows/cols shift by k//2.
                p = 2 * (kh % 2) + (kw % 2)
                t = x_ref[pl.ds(kh // 2, Ho), pl.ds(kw // 2, Wo),
                          pl.ds(p * cin, cin)]
            taps.append(t.reshape(M, cin))
    acc1 = jnp.dot(jnp.concatenate(taps, axis=-1), w1_ref[...],
                   preferred_element_type=jnp.float32)          # (M, Pc) f32

    # folded BN1 (eval) + ReLU
    y1 = jnp.maximum(acc1 * s1_ref[...] + b1_ref[...], 0.0)

    # Zero ONLY the 1-pixel halo border of the conv2 input scratch (the
    # interior is fully overwritten below).  Re-done every step so it is safe
    # under "parallel" batch sharding (scratch is per-core, uninitialized).
    Ws = y1p_ref.shape[1]
    zrow = jnp.zeros((1, Ws, Pc), y1p_ref.dtype)
    y1p_ref[pl.ds(0, 1), :, :] = zrow
    y1p_ref[pl.ds(Ho + 1, 1), :, :] = zrow
    zcol = jnp.zeros((Ho, 1, Pc), y1p_ref.dtype)
    y1p_ref[pl.ds(1, Ho), pl.ds(0, 1), :] = zcol
    y1p_ref[pl.ds(1, Ho), pl.ds(Wo + 1, 1), :] = zcol
    y1p_ref[pl.ds(1, Ho), pl.ds(1, Wo), :] = (
        y1.reshape(Ho, Wo, Pc).astype(y1p_ref.dtype))

    # ---- conv2 (3x3, stride 1, pad=1) on the VMEM-resident y1: 1 dot -------
    taps2 = [y1p_ref[pl.ds(kh, Ho), pl.ds(kw, Wo), :].reshape(M, Pc)
             for kh in range(3) for kw in range(3)]
    acc2 = jnp.dot(jnp.concatenate(taps2, axis=-1), w2_ref[...],
                   preferred_element_type=jnp.float32)          # (M, Pc) f32

    # folded BN2 + residual add + ReLU; store only the real `planes` channels
    y2 = acc2 * s2_ref[...] + b2_ref[...]
    res = res_ref[...].astype(jnp.float32).reshape(M, planes)
    out = jnp.maximum(y2[:, :planes] + res, 0.0)
    o_ref[...] = out.reshape(Ho, Wo, planes)


# ---------------------------------------------------------------------------
# Param folding helpers
# ---------------------------------------------------------------------------
def _fold_conv_weight(w_oihw, cin_pad, cout_pad):
    """(O, I, 3, 3) -> (9*cin_pad, cout_pad) bf16, rows ordered (kh, kw, cin)."""
    O, I = w_oihw.shape[0], w_oihw.shape[1]
    w = jnp.transpose(w_oihw, (2, 3, 1, 0))                      # (3,3,I,O)
    w = jnp.pad(w, ((0, 0), (0, 0), (0, cin_pad - I), (0, cout_pad - O)))
    return w.reshape(9 * cin_pad, cout_pad).astype(jnp.bfloat16)


def _fold_bn(gamma, beta, mean, var, Pc):
    scale = gamma / jnp.sqrt(var + EPS)
    bias = beta - mean * scale
    pad = Pc - scale.shape[0]
    scale = jnp.pad(scale, (0, pad)).reshape(1, Pc).astype(jnp.float32)
    bias = jnp.pad(bias, (0, pad)).reshape(1, Pc).astype(jnp.float32)
    return scale, bias


# ---------------------------------------------------------------------------
# Wrapper: layout prep, residual path, pallas_call
# ---------------------------------------------------------------------------
def basic_block_forward(x_nchw, params, stride=1, shortcut=0):
    """BasicBlock forward.  x: (N,C,H,W) f32 -> (N, planes, Ho, Wo) f32."""
    assert stride in (1, 2), "kernel supports stride 1 or 2"
    x = jnp.transpose(x_nchw, (0, 2, 3, 1)).astype(jnp.float32)  # NCHW -> NHWC
    N, H, W, cin = x.shape
    planes = params["w1"].shape[0]
    Pc = _round_up(planes, LANE)

    if shortcut == 1:
        assert stride == 2 and planes == 2 * cin and H % 2 == 0 and W % 2 == 0, (
            "shortcut==1 (avgpool + zero-concat) requires stride=2, "
            "planes=2*in_planes, even H/W")
    else:
        assert stride == 1 and cin == planes, \
            "identity shortcut requires stride==1 and in_planes==planes"

    Ho = (H + 2 - 3) // stride + 1
    Wo = (W + 2 - 3) // stride + 1

    # ---- input layout: spatial pre-pad (bf16 for the MXU).  For stride=2,
    # deinterleave the padded input into its 4 (row,col) phases folded into
    # the channel dim so in-kernel taps are contiguous, non-strided slices.
    xp = jnp.pad(x, ((0, 0), (1, 1), (1, 1), (0, 0)))            # (N,H+2,W+2,C)
    if stride == 1:
        Wx = _round_up(W + 2, 8)                                 # sublane-align
        xk = jnp.pad(xp, ((0, 0), (0, 0), (0, Wx - (W + 2)), (0, 0)))
        xk = xk.astype(jnp.bfloat16)                             # (N,H+2,Wx,C)
        x_spec = pl.BlockSpec((None, H + 2, Wx, cin), lambda n: (n, 0, 0, 0))
    else:
        phases = [xp[:, ph::2, pw::2, :] for ph in range(2) for pw in range(2)]
        xk = jnp.concatenate(phases, axis=-1)                    # (N,Ho+1,Wo+1,4C)
        Wx = _round_up(Wo + 1, 8)
        xk = jnp.pad(xk, ((0, 0), (0, 0), (0, Wx - (Wo + 1)), (0, 0)))
        xk = xk.astype(jnp.bfloat16)
        x_spec = pl.BlockSpec((None, Ho + 1, Wx, 4 * cin), lambda n: (n, 0, 0, 0))

    # ---- residual path (plain JAX), bf16, NO channel padding in HBM --------
    if shortcut == 1:
        pooled = x.reshape(N, Ho, 2, Wo, 2, cin).mean(axis=(2, 4))
        residual = jnp.concatenate([pooled, jnp.zeros_like(pooled)], axis=-1)
    else:
        residual = x
    residual = residual.astype(jnp.bfloat16)                     # (N,Ho,Wo,planes)

    # ---- folded weights / BN -----------------------------------------------
    w1 = _fold_conv_weight(params["w1"], cin, Pc)                # (9*cin, Pc)
    w2 = _fold_conv_weight(params["w2"], Pc, Pc)                 # (9*Pc, Pc)
    s1, b1 = _fold_bn(params["bn1_gamma"], params["bn1_beta"],
                      params["bn1_mean"], params["bn1_var"], Pc)
    s2, b2 = _fold_bn(params["bn2_gamma"], params["bn2_beta"],
                      params["bn2_mean"], params["bn2_var"], Pc)

    Ws = _round_up(Wo + 2, 8)                                    # scratch W dim
    kernel = functools.partial(_basic_block_kernel, stride=stride)

    flops = 2 * N * Ho * Wo * Pc * (9 * cin + 9 * Pc)
    bytes_accessed = int(xk.size * 2 + residual.size * 2
                         + N * Ho * Wo * planes * 4
                         + w1.size * 2 + w2.size * 2 + 4 * Pc * 4)

    out = pl.pallas_call(
        kernel,
        out_shape=jax.ShapeDtypeStruct((N, Ho, Wo, planes), jnp.float32),
        grid=(N,),
        in_specs=[
            x_spec,
            pl.BlockSpec((9 * cin, Pc), lambda n: (0, 0)),       # w1 (resident)
            pl.BlockSpec((9 * Pc, Pc), lambda n: (0, 0)),        # w2 (resident)
            pl.BlockSpec((1, Pc), lambda n: (0, 0)),             # s1
            pl.BlockSpec((1, Pc), lambda n: (0, 0)),             # b1
            pl.BlockSpec((1, Pc), lambda n: (0, 0)),             # s2
            pl.BlockSpec((1, Pc), lambda n: (0, 0)),             # b2
            pl.BlockSpec((None, Ho, Wo, planes), lambda n: (n, 0, 0, 0)),
        ],
        out_specs=pl.BlockSpec((None, Ho, Wo, planes), lambda n: (n, 0, 0, 0)),
        scratch_shapes=[pltpu.VMEM((Ho + 2, Ws, Pc), jnp.bfloat16)],
        compiler_params=pltpu.CompilerParams(
            dimension_semantics=("parallel",),       # batch split across TCs
            vmem_limit_bytes=64 * 1024 * 1024),      # working set here is ~1 MiB
        cost_estimate=pl.CostEstimate(
            flops=flops, transcendentals=0, bytes_accessed=bytes_accessed),
    )(xk, w1, w2, s1, b1, s2, b2, residual)

    return jnp.transpose(out, (0, 3, 1, 2))                      # NHWC -> NCHW
    # TODO(synk): for large feature maps (>~64x64 spatial, Pc>=256) add an
    # output-row grid axis with a 1/2-row halo so per-step VMEM stays bounded.
    # TODO(synk): single-buffer (pl.Buffered(1)) the grid-invariant weight/BN
    # blocks to reclaim VMEM on v7x once needed; they are tiny at these sizes.


def init_params(key, in_planes, planes):
    ks = jax.random.split(key, 10)
    return {
        "w1": 0.1 * jax.random.normal(ks[0], (planes, in_planes, 3, 3), jnp.float32),
        "w2": 0.1 * jax.random.normal(ks[1], (planes, planes, 3, 3), jnp.float32),
        "bn1_gamma": 1.0 + 0.1 * jax.random.normal(ks[2], (planes,), jnp.float32),
        "bn1_beta": 0.1 * jax.random.normal(ks[3], (planes,), jnp.float32),
        "bn1_mean": 0.1 * jax.random.normal(ks[4], (planes,), jnp.float32),
        "bn1_var": 0.5 + jnp.abs(jax.random.normal(ks[5], (planes,), jnp.float32)),
        "bn2_gamma": 1.0 + 0.1 * jax.random.normal(ks[6], (planes,), jnp.float32),
        "bn2_beta": 0.1 * jax.random.normal(ks[7], (planes,), jnp.float32),
        "bn2_mean": 0.1 * jax.random.normal(ks[8], (planes,), jnp.float32),
        "bn2_var": 0.5 + jnp.abs(jax.random.normal(ks[9], (planes,), jnp.float32)),
    }


# ---------------------------------------------------------------------------
# Pure-JAX f32 reference (sanity check)
# ---------------------------------------------------------------------------
def _reference(x_nchw, params, stride, shortcut):
    def conv(x, w, s):
        return jax.lax.conv_general_dilated(
            x, w, (s, s), ((1, 1), (1, 1)),
            dimension_numbers=("NCHW", "OIHW", "NCHW"))

    def bn(y, g, b, m, v):
        g = g[None, :, None, None]; b = b[None, :, None, None]
        m = m[None, :, None, None]; v = v[None, :, None, None]
        return (y - m) / jnp.sqrt(v + EPS) * g + b

    y = jax.nn.relu(bn(conv(x_nchw, params["w1"], stride),
                       params["bn1_gamma"], params["bn1_beta"],
                       params["bn1_mean"], params["bn1_var"]))
    y = bn(conv(y, params["w2"], 1),
           params["bn2_gamma"], params["bn2_beta"],
           params["bn2_mean"], params["bn2_var"])
    if shortcut == 1:
        N, C, H, W = x_nchw.shape
        pooled = x_nchw.reshape(N, C, H // 2, 2, W // 2, 2).mean(axis=(3, 5))
        residual = jnp.concatenate([pooled, jnp.zeros_like(pooled)], axis=1)
    else:
        residual = x_nchw
    return jax.nn.relu(y + residual)


if __name__ == "__main__":
    key = jax.random.PRNGKey(0)
    k_x, k_p1, k_p2 = jax.random.split(key, 3)

    # Block 1: down-sampling — in_planes=4, planes=8, stride=2, shortcut=1
    N, in_planes, H, W = 2, 4, 16, 16
    planes = 8

    x = jax.random.normal(k_x, (N, in_planes, H, W), jnp.float32)
    params1 = init_params(k_p1, in_planes, planes)
    params2 = init_params(k_p2, planes, planes)

    out1 = basic_block_forward(x, params1, stride=2, shortcut=1)
    jax.block_until_ready(out1)
    ref1 = _reference(x, params1, 2, 1)
    assert out1.shape == (N, planes, H // 2, W // 2)
    assert jnp.allclose(out1, ref1, rtol=3e-2, atol=3e-2), \
        f"block1 max err {float(jnp.max(jnp.abs(out1 - ref1)))}"

    # Block 2: identity — planes=8, stride=1, shortcut=0, chained on block 1
    out2 = basic_block_forward(out1, params2, stride=1, shortcut=0)
    jax.block_until_ready(out2)
    ref2 = _reference(out1, params2, 1, 0)
    assert out2.shape == (N, planes, H // 2, W // 2)
    assert jnp.allclose(out2, ref2, rtol=3e-2, atol=3e-2), \
        f"block2 max err {float(jnp.max(jnp.abs(out2 - ref2)))}"

    print("KERNEL_OK")
</pallas_src>

<mosaic_0001>
module attributes {stable_mosaic.version = 11 : i64} {
  func.func @_basic_block_kernel(%arg0: i32, %arg1: memref<1x9x16x16xbf16, #tpu.memory_space<vmem>>, %arg2: memref<36x128xbf16, #tpu.memory_space<vmem>>, %arg3: memref<1152x128xbf16, #tpu.memory_space<vmem>>, %arg4: memref<1x128xf32, #tpu.memory_space<vmem>>, %arg5: memref<1x128xf32, #tpu.memory_space<vmem>>, %arg6: memref<1x128xf32, #tpu.memory_space<vmem>>, %arg7: memref<1x128xf32, #tpu.memory_space<vmem>>, %arg8: memref<1x8x8x8xbf16, #tpu.memory_space<vmem>>, %arg9: memref<1x8x8x8xf32, #tpu.memory_space<vmem>>, %arg10: memref<10x16x128xbf16, #tpu.memory_space<vmem>>) attributes {dimension_semantics = [#tpu.dimension_semantics<parallel>], iteration_bounds = array<i64: 2>, scalar_prefetch = 0 : i64, scratch_operands = 1 : i64, tpu.core_type = #tpu.core_type<tc>, window_params = [{transform_indices = @transform_0, window_bounds = array<i64: 1, 9, 16, 16>}, {pipeline_mode = #tpu.pipeline_mode<synchronous>, transform_indices = @transform_1, window_bounds = array<i64: 36, 128>}, {pipeline_mode = #tpu.pipeline_mode<synchronous>, transform_indices = @transform_2, window_bounds = array<i64: 1152, 128>}, {pipeline_mode = #tpu.pipeline_mode<synchronous>, transform_indices = @transform_3, window_bounds = array<i64: 1, 128>}, {pipeline_mode = #tpu.pipeline_mode<synchronous>, transform_indices = @transform_4, window_bounds = array<i64: 1, 128>}, {pipeline_mode = #tpu.pipeline_mode<synchronous>, transform_indices = @transform_5, window_bounds = array<i64: 1, 128>}, {pipeline_mode = #tpu.pipeline_mode<synchronous>, transform_indices = @transform_6, window_bounds = array<i64: 1, 128>}, {transform_indices = @transform_7, window_bounds = array<i64: 1, 8, 8, 8>}, {transform_indices = @transform_8, window_bounds = array<i64: 1, 8, 8, 8>}]} {
    %c0 = arith.constant 0 : index
    %c0_0 = arith.constant 0 : index
    %c0_1 = arith.constant 0 : index
    %c0_2 = arith.constant 0 : index
    %0 = vector.load %arg1[%c0, %c0_0, %c0_1, %c0_2] : memref<1x9x16x16xbf16, #tpu.memory_space<vmem>>, vector<1x8x8x4xbf16>
    %1 = vector.shape_cast %0 : vector<1x8x8x4xbf16> to vector<8x8x4xbf16>
    %2 = vector.shape_cast %1 : vector<8x8x4xbf16> to vector<64x4xbf16>
    %c0_3 = arith.constant 0 : index
    %c0_4 = arith.constant 0 : index
    %c0_5 = arith.constant 0 : index
    %c4 = arith.constant 4 : index
    %3 = vector.load %arg1[%c0_3, %c0_4, %c0_5, %c4] : memref<1x9x16x16xbf16, #tpu.memory_space<vmem>>, vector<1x8x8x4xbf16>
    %4 = vector.shape_cast %3 : vector<1x8x8x4xbf16> to vector<8x8x4xbf16>
    %5 = vector.shape_cast %4 : vector<8x8x4xbf16> to vector<64x4xbf16>
    %c0_6 = arith.constant 0 : index
    %c0_7 = arith.constant 0 : index
    %c1 = arith.constant 1 : index
    %c0_8 = arith.constant 0 : index
    %6 = vector.load %arg1[%c0_6, %c0_7, %c1, %c0_8] : memref<1x9x16x16xbf16, #tpu.memory_space<vmem>>, vector<1x8x8x4xbf16>
    %7 = vector.shape_cast %6 : vector<1x8x8x4xbf16> to vector<8x8x4xbf16>
    %8 = vector.shape_cast %7 : vector<8x8x4xbf16> to vector<64x4xbf16>
    %c0_9 = arith.constant 0 : index
    %c0_10 = arith.constant 0 : index
    %c0_11 = arith.constant 0 : index
    %c8 = arith.constant 8 : index
    %9 = vector.load %arg1[%c0_9, %c0_10, %c0_11, %c8] : memref<1x9x16x16xbf16, #tpu.memory_space<vmem>>, vector<1x8x8x4xbf16>
    %10 = vector.shape_cast %9 : vector<1x8x8x4xbf16> to vector<8x8x4xbf16>
    %11 = vector.shape_cast %10 : vector<8x8x4xbf16> to vector<64x4xbf16>
    %c0_12 = arith.constant 0 : index
    %c0_13 = arith.constant 0 : index
    %c0_14 = arith.constant 0 : index
    %c12 = arith.constant 12 : index
    %12 = vector.load %arg1[%c0_12, %c0_13, %c0_14, %c12] : memref<1x9x16x16xbf16, #tpu.memory_space<vmem>>, vector<1x8x8x4xbf16>
    %13 = vector.shape_cast %12 : vector<1x8x8x4xbf16> to vector<8x8x4xbf16>
    %14 = vector.shape_cast %13 : vector<8x8x4xbf16> to vector<64x4xbf16>
    %c0_15 = arith.constant 0 : index
    %c0_16 = arith.constant 0 : index
    %c1_17 = arith.constant 1 : index
    %c8_18 = arith.constant 8 : index
    %15 = vector.load %arg1[%c0_15, %c0_16, %c1_17, %c8_18] : memref<1x9x16x16xbf16, #tpu.memory_space<vmem>>, vector<1x8x8x4xbf16>
    %16 = vector.shape_cast %15 : vector<1x8x8x4xbf16> to vector<8x8x4xbf16>
    %17 = vector.shape_cast %16 : vector<8x8x4xbf16> to vector<64x4xbf16>
    %c0_19 = arith.constant 0 : index
    %c1_20 = arith.constant 1 : index
    %c0_21 = arith.constant 0 : index
    %c0_22 = arith.constant 0 : index
    %18 = vector.load %arg1[%c0_19, %c1_20, %c0_21, %c0_22] : memref<1x9x16x16xbf16, #tpu.memory_space<vmem>>, vector<1x8x8x4xbf16>
    %19 = vector.shape_cast %18 : vector<1x8x8x4xbf16> to vector<8x8x4xbf16>
    %20 = vector.shape_cast %19 : vector<8x8x4xbf16> to vector<64x4xbf16>
    %c0_23 = arith.constant 0 : index
    %c1_24 = arith.constant 1 : index
    %c0_25 = arith.constant 0 : index
    %c4_26 = arith.constant 4 : index
    %21 = vector.load %arg1[%c0_23, %c1_24, %c0_25, %c4_26] : memref<1x9x16x16xbf16, #tpu.memory_space<vmem>>, vector<1x8x8x4xbf16>
    %22 = vector.shape_cast %21 : vector<1x8x8x4xbf16> to vector<8x8x4xbf16>
    %23 = vector.shape_cast %22 : vector<8x8x4xbf16> to vector<64x4xbf16>
    %c0_27 = arith.constant 0 : index
    %c1_28 = arith.constant 1 : index
    %c1_29 = arith.constant 1 : index
    %c0_30 = arith.constant 0 : index
    %24 = vector.load %arg1[%c0_27, %c1_28, %c1_29, %c0_30] : memref<1x9x16x16xbf16, #tpu.memory_space<vmem>>, vector<1x8x8x4xbf16>
    %25 = vector.shape_cast %24 : vector<1x8x8x4xbf16> to vector<8x8x4xbf16>
    %26 = vector.shape_cast %25 : vector<8x8x4xbf16> to vector<64x4xbf16>
    %27 = tpu.concatenate %2, %5, %8, %11, %14, %17, %20, %23, %26 in 1 : vector<64x4xbf16>, vector<64x4xbf16>, vector<64x4xbf16>, vector<64x4xbf16>, vector<64x4xbf16>, vector<64x4xbf16>, vector<64x4xbf16>, vector<64x4xbf16>, vector<64x4xbf16> -> vector<64x36xbf16>
    %c0_31 = arith.constant 0 : index
    %c0_32 = arith.constant 0 : index
    %28 = vector.load %arg2[%c0_31, %c0_32] : memref<36x128xbf16, #tpu.memory_space<vmem>>, vector<36x128xbf16>
    %cst = arith.constant dense<0.000000e+00> : vector<64x128xf32>
    %29 = tpu.matmul %27, %28, %cst {dimension_numbers = #tpu.dot_dimension_numbers<[1], [0], [0], [1], [0, 0, 1, 1], [], []>} : vector<64x36xbf16>, vector<36x128xbf16>, vector<64x128xf32> -> vector<64x128xf32>
    %c0_33 = arith.constant 0 : index
    %c0_34 = arith.constant 0 : index
    %30 = vector.load %arg4[%c0_33, %c0_34] : memref<1x128xf32, #tpu.memory_space<vmem>>, vector<1x128xf32>
    %31 = vector.broadcast %30 : vector<1x128xf32> to vector<64x128xf32>
    %32 = arith.mulf %29, %31 : vector<64x128xf32>
    %c0_35 = arith.constant 0 : index
    %c0_36 = arith.constant 0 : index
    %33 = vector.load %arg5[%c0_35, %c0_36] : memref<1x128xf32, #tpu.memory_space<vmem>>, vector<1x128xf32>
    %34 = vector.broadcast %33 : vector<1x128xf32> to vector<64x128xf32>
    %35 = arith.addf %32, %34 : vector<64x128xf32>
    %cst_37 = arith.constant 0.000000e+00 : f32
    %36 = vector.broadcast %cst_37 : f32 to vector<64x128xf32>
    %37 = arith.maximumf %35, %36 : vector<64x128xf32>
    %cst_38 = arith.constant 0.000000e+00 : bf16
    %38 = vector.broadcast %cst_38 : bf16 to vector<1x16x128xbf16>
    %c0_39 = arith.constant 0 : index
    %c0_40 = arith.constant 0 : index
    %c0_41 = arith.constant 0 : index
    %39 = vector.load %arg10[%c0_39, %c0_40, %c0_41] : memref<10x16x128xbf16, #tpu.memory_space<vmem>>, vector<1x16x128xbf16>
    tpu.vector_store %arg10[%c0_39, %c0_40, %c0_41], %38 {strides = array<i32>} : memref<10x16x128xbf16, #tpu.memory_space<vmem>>, vector<1x16x128xbf16>,
    %c9 = arith.constant 9 : index
    %c0_42 = arith.constant 0 : index
    %c0_43 = arith.constant 0 : index
    %40 = vector.load %arg10[%c9, %c0_42, %c0_43] : memref<10x16x128xbf16, #tpu.memory_space<vmem>>, vector<1x16x128xbf16>
    tpu.vector_store %arg10[%c9, %c0_42, %c0_43], %38 {strides = array<i32>} : memref<10x16x128xbf16, #tpu.memory_space<vmem>>, vector<1x16x128xbf16>,
    %cst_44 = arith.constant 0.000000e+00 : bf16
    %41 = vector.broadcast %cst_44 : bf16 to vector<8x1x128xbf16>
    %c1_45 = arith.constant 1 : index
    %c0_46 = arith.constant 0 : index
    %c0_47 = arith.constant 0 : index
    %42 = vector.load %arg10[%c1_45, %c0_46, %c0_47] : memref<10x16x128xbf16, #tpu.memory_space<vmem>>, vector<8x1x128xbf16>
    tpu.vector_store %arg10[%c1_45, %c0_46, %c0_47], %41 {strides = array<i32>} : memref<10x16x128xbf16, #tpu.memory_space<vmem>>, vector<8x1x128xbf16>,
    %c1_48 = arith.constant 1 : index
    %c9_49 = arith.constant 9 : index
    %c0_50 = arith.constant 0 : index
    %43 = vector.load %arg10[%c1_48, %c9_49, %c0_50] : memref<10x16x128xbf16, #tpu.memory_space<vmem>>, vector<8x1x128xbf16>
    tpu.vector_store %arg10[%c1_48, %c9_49, %c0_50], %41 {strides = array<i32>} : memref<10x16x128xbf16, #tpu.memory_space<vmem>>, vector<8x1x128xbf16>,
    %44 = vector.shape_cast %37 : vector<64x128xf32> to vector<8x8x128xf32>
    %45 = arith.truncf %44 : vector<8x8x128xf32> to vector<8x8x128xbf16>
    %c1_51 = arith.constant 1 : index
    %c1_52 = arith.constant 1 : index
    %c0_53 = arith.constant 0 : index
    %46 = vector.load %arg10[%c1_51, %c1_52, %c0_53] : memref<10x16x128xbf16, #tpu.memory_space<vmem>>, vector<8x8x128xbf16>
    tpu.vector_store %arg10[%c1_51, %c1_52, %c0_53], %45 {strides = array<i32>} : memref<10x16x128xbf16, #tpu.memory_space<vmem>>, vector<8x8x128xbf16>,
    %c0_54 = arith.constant 0 : index
    %c0_55 = arith.constant 0 : index
    %c0_56 = arith.constant 0 : index
    %47 = vector.load %arg10[%c0_54, %c0_55, %c0_56] : memref<10x16x128xbf16, #tpu.memory_space<vmem>>, vector<8x8x128xbf16>
    %48 = vector.shape_cast %47 : vector<8x8x128xbf16> to vector<64x128xbf16>
    %c0_57 = arith.constant 0 : index
    %c1_58 = arith.constant 1 : index
    %c0_59 = arith.constant 0 : index
    %49 = vector.load %arg10[%c0_57, %c1_58, %c0_59] : memref<10x16x128xbf16, #tpu.memory_space<vmem>>, vector<8x8x128xbf16>
    %50 = vector.shape_cast %49 : vector<8x8x128xbf16> to vector<64x128xbf16>
    %c0_60 = arith.constant 0 : index
    %c2 = arith.constant 2 : index
    %c0_61 = arith.constant 0 : index
    %51 = vector.load %arg10[%c0_60, %c2, %c0_61] : memref<10x16x128xbf16, #tpu.memory_space<vmem>>, vector<8x8x128xbf16>
    %52 = vector.shape_cast %51 : vector<8x8x128xbf16> to vector<64x128xbf16>
    %c1_62 = arith.constant 1 : index
    %c0_63 = arith.constant 0 : index
    %c0_64 = arith.constant 0 : index
    %53 = vector.load %arg10[%c1_62, %c0_63, %c0_64] : memref<10x16x128xbf16, #tpu.memory_space<vmem>>, vector<8x8x128xbf16>
    %54 = vector.shape_cast %53 : vector<8x8x128xbf16> to vector<64x128xbf16>
    %c1_65 = arith.constant 1 : index
    %c1_66 = arith.constant 1 : index
    %c0_67 = arith.constant 0 : index
    %55 = vector.load %arg10[%c1_65, %c1_66, %c0_67] : memref<10x16x128xbf16, #tpu.memory_space<vmem>>, vector<8x8x128xbf16>
    %56 = vector.shape_cast %55 : vector<8x8x128xbf16> to vector<64x128xbf16>
    %c1_68 = arith.constant 1 : index
    %c2_69 = arith.constant 2 : index
    %c0_70 = arith.constant 0 : index
    %57 = vector.load %arg10[%c1_68, %c2_69, %c0_70] : memref<10x16x128xbf16, #tpu.memory_space<vmem>>, vector<8x8x128xbf16>
    %58 = vector.shape_cast %57 : vector<8x8x128xbf16> to vector<64x128xbf16>
    %c2_71 = arith.constant 2 : index
    %c0_72 = arith.constant 0 : index
    %c0_73 = arith.constant 0 : index
    %59 = vector.load %arg10[%c2_71, %c0_72, %c0_73] : memref<10x16x128xbf16, #tpu.memory_space<vmem>>, vector<8x8x128xbf16>
    %60 = vector.shape_cast %59 : vector<8x8x128xbf16> to vector<64x128xbf16>
    %c2_74 = arith.constant 2 : index
    %c1_75 = arith.constant 1 : index
    %c0_76 = arith.constant 0 : index
    %61 = vector.load %arg10[%c2_74, %c1_75, %c0_76] : memref<10x16x128xbf16, #tpu.memory_space<vmem>>, vector<8x8x128xbf16>
    %62 = vector.shape_cast %61 : vector<8x8x128xbf16> to vector<64x128xbf16>
    %c2_77 = arith.constant 2 : index
    %c2_78 = arith.constant 2 : index
    %c0_79 = arith.constant 0 : index
    %63 = vector.load %arg10[%c2_77, %c2_78, %c0_79] : memref<10x16x128xbf16, #tpu.memory_space<vmem>>, vector<8x8x128xbf16>
    %64 = vector.shape_cast %63 : vector<8x8x128xbf16> to vector<64x128xbf16>
    %65 = tpu.concatenate %48, %50, %52, %54, %56, %58, %60, %62, %64 in 1 : vector<64x128xbf16>, vector<64x128xbf16>, vector<64x128xbf16>, vector<64x128xbf16>, vector<64x128xbf16>, vector<64x128xbf16>, vector<64x128xbf16>, vector<64x128xbf16>, vector<64x128xbf16> -> vector<64x1152xbf16>
    %c0_80 = arith.constant 0 : index
    %c0_81 = arith.constant 0 : index
    %66 = vector.load %arg3[%c0_80, %c0_81] : memref<1152x128xbf16, #tpu.memory_space<vmem>>, vector<1152x128xbf16>
    %cst_82 = arith.constant dense<0.000000e+00> : vector<64x128xf32>
    %67 = tpu.matmul %65, %66, %cst_82 {dimension_numbers = #tpu.dot_dimension_numbers<[1], [0], [0], [1], [0, 0, 1, 1], [], []>} : vector<64x1152xbf16>, vector<1152x128xbf16>, vector<64x128xf32> -> vector<64x128xf32>
    %c0_83 = arith.constant 0 : index
    %c0_84 = arith.constant 0 : index
    %68 = vector.load %arg6[%c0_83, %c0_84] : memref<1x128xf32, #tpu.memory_space<vmem>>, vector<1x128xf32>
    %69 = vector.broadcast %68 : vector<1x128xf32> to vector<64x128xf32>
    %70 = arith.mulf %67, %69 : vector<64x128xf32>
    %c0_85 = arith.constant 0 : index
    %c0_86 = arith.constant 0 : index
    %71 = vector.load %arg7[%c0_85, %c0_86] : memref<1x128xf32, #tpu.memory_space<vmem>>, vector<1x128xf32>
    %72 = vector.broadcast %71 : vector<1x128xf32> to vector<64x128xf32>
    %73 = arith.addf %70, %72 : vector<64x128xf32>
    %c0_87 = arith.constant 0 : index
    %c0_88 = arith.constant 0 : index
    %c0_89 = arith.constant 0 : index
    %c0_90 = arith.constant 0 : index
    %74 = vector.load %arg8[%c0_87, %c0_88, %c0_89, %c0_90] : memref<1x8x8x8xbf16, #tpu.memory_space<vmem>>, vector<1x8x8x8xbf16>
    %75 = vector.shape_cast %74 : vector<1x8x8x8xbf16> to vector<8x8x8xbf16>
    %76 = arith.extf %75 : vector<8x8x8xbf16> to vector<8x8x8xf32>
    %77 = vector.shape_cast %76 : vector<8x8x8xf32> to vector<64x8xf32>
    %78 = vector.extract_strided_slice %73 {offsets = [0, 0], sizes = [64, 8], strides = [1, 1]} : vector<64x128xf32> to vector<64x8xf32>
    %79 = arith.addf %78, %77 : vector<64x8xf32>
    %cst_91 = arith.constant 0.000000e+00 : f32
    %80 = vector.broadcast %cst_91 : f32 to vector<64x8xf32>
    %81 = arith.maximumf %79, %80 : vector<64x8xf32>
    %82 = vector.shape_cast %81 : vector<64x8xf32> to vector<8x8x8xf32>
    %c0_92 = arith.constant 0 : index
    %c0_93 = arith.constant 0 : index
    %c0_94 = arith.constant 0 : index
    %c0_95 = arith.constant 0 : index
    %83 = vector.load %arg9[%c0_92, %c0_93, %c0_94, %c0_95] : memref<1x8x8x8xf32, #tpu.memory_space<vmem>>, vector<1x8x8x8xf32>
    %84 = vector.shape_cast %83 : vector<1x8x8x8xf32> to vector<8x8x8xf32>
    %85 = vector.shape_cast %82 : vector<8x8x8xf32> to vector<1x8x8x8xf32>
    tpu.vector_store %arg9[%c0_92, %c0_93, %c0_94, %c0_95], %85 {strides = array<i32>} : memref<1x8x8x8xf32, #tpu.memory_space<vmem>>, vector<1x8x8x8xf32>,
    return
  }
  func.func @transform_0(%arg0: i32) -> (i32, i32, i32, i32) {
    %c0_i32 = arith.constant 0 : i32
    %c0_i32_0 = arith.constant 0 : i32
    %c0_i32_1 = arith.constant 0 : i32
    %c0_i32_2 = arith.constant 0 : i32
    return %arg0, %c0_i32, %c0_i32_0, %c0_i32_1 : i32, i32, i32, i32
  }
  func.func @transform_1(%arg0: i32) -> (i32, i32) {
    %c0_i32 = arith.constant 0 : i32
    %c0_i32_0 = arith.constant 0 : i32
    %c0_i32_1 = arith.constant 0 : i32
    return %c0_i32, %c0_i32_0 : i32, i32
  }
  func.func @transform_2(%arg0: i32) -> (i32, i32) {
    %c0_i32 = arith.constant 0 : i32
    %c0_i32_0 = arith.constant 0 : i32
    %c0_i32_1 = arith.constant 0 : i32
    return %c0_i32, %c0_i32_0 : i32, i32
  }
  func.func @transform_3(%arg0: i32) -> (i32, i32) {
    %c0_i32 = arith.constant 0 : i32
    %c0_i32_0 = arith.constant 0 : i32
    %c0_i32_1 = arith.constant 0 : i32
    return %c0_i32, %c0_i32_0 : i32, i32
  }
  func.func @transform_4(%arg0: i32) -> (i32, i32) {
    %c0_i32 = arith.constant 0 : i32
    %c0_i32_0 = arith.constant 0 : i32
    %c0_i32_1 = arith.constant 0 : i32
    return %c0_i32, %c0_i32_0 : i32, i32
  }
  func.func @transform_5(%arg0: i32) -> (i32, i32) {
    %c0_i32 = arith.constant 0 : i32
    %c0_i32_0 = arith.constant 0 : i32
    %c0_i32_1 = arith.constant 0 : i32
    return %c0_i32, %c0_i32_0 : i32, i32
  }
  func.func @transform_6(%arg0: i32) -> (i32, i32) {
    %c0_i32 = arith.constant 0 : i32
    %c0_i32_0 = arith.constant 0 : i32
    %c0_i32_1 = arith.constant 0 : i32
    return %c0_i32, %c0_i32_0 : i32, i32
  }
  func.func @transform_7(%arg0: i32) -> (i32, i32, i32, i32) {
    %c0_i32 = arith.constant 0 : i32
    %c0_i32_0 = arith.constant 0 : i32
    %c0_i32_1 = arith.constant 0 : i32
    %c0_i32_2 = arith.constant 0 : i32
    return %arg0, %c0_i32, %c0_i32_0, %c0_i32_1 : i32, i32, i32, i32
  }
  func.func @transform_8(%arg0: i32) -> (i32, i32, i32, i32) {
    %c0_i32 = arith.constant 0 : i32
    %c0_i32_0 = arith.constant 0 : i32
    %c0_i32_1 = arith.constant 0 : i32
    %c0_i32_2 = arith.constant 0 : i32
    return %arg0, %c0_i32, %c0_i32_0, %c0_i32_1 : i32, i32, i32, i32
  }
}

</mosaic_0001>

<bundles_post_ra>
// kernel: tpu_custom_call.1
= control target key start
LH: loop header
LB: loop body
LE: loop exit
PB: predicated region body
PF: predicated region fallthrough
CT: control target
= control target key end

     0   :  { %s5291_s0 = inlined_call_operand.hbm [shape: bf16[2,9,16,16], index: 0, kind: input, shape index: {}]   ;;  %s5292_s1 = inlined_call_operand.hbm [shape: bf16[36,128], index: 1, kind: input, shape index: {}]   ;;  %s5293_s2 = inlined_call_operand.hbm [shape: bf16[1152,128], index: 2, kind: input, shape index: {}]   ;;  %s5294_s3 = inlined_call_operand.hbm [shape: f32[1,128], index: 3, kind: input, shape index: {}]   ;;  %s5295_s4 = inlined_call_operand.hbm [shape: f32[1,128], index: 4, kind: input, shape index: {}]   ;;  %s5296_s5 = inlined_call_operand.hbm [shape: f32[1,128], index: 5, kind: input, shape index: {}]   ;;  %s5297_s6 = inlined_call_operand.hbm [shape: f32[1,128], index: 6, kind: input, shape index: {}]   ;;  %s5298_s7 = inlined_call_operand.hbm [shape: bf16[2,8,8,8], index: 7, kind: input, shape index: {}]   ;;  %s5299_s8 = inlined_call_operand.hbm [shape: f32[2,8,8,8], index: 8, kind: output, shape index: {}]  }
   0x1   :  { %5307 = sst [smem:[#allocation24_spill]] %s5291_s0 }
   0x2   :  { %5308 = sst [smem:[#allocation25_spill]] %s5292_s1 }
   0x3   :  { %5309 = sst [smem:[#allocation26_spill]] %s5293_s2 }
   0x4   :  { %5310 = sst [smem:[#allocation27_spill]] %s5294_s3 }
   0x5   :  { %5311 = sst [smem:[#allocation28_spill]] %s5295_s4 }
   0x6   :  { %13 = vsyncpa [#allocation4], 0 }
   0x7   :  { %15 = vsyncpa [#allocation4 + $0x1], 0 }
   0x8   :  { %16 = vsyncpa [#allocation7], 0 }
   0x9   :  { %17 = vsyncpa [#allocation10], 0 }
   0xa   :  { %18 = vsyncpa [#allocation13], 0 }
   0xb   :  { %19 = vsyncpa [#allocation16], 0 }
   0xc   :  { %21 = vsyncpa [#allocation16 + $0x1], 0 }
   0xd   :  { %22 = vsyncpa [#allocation5], 0 }
   0xe   :  { %24 = vsyncpa [#allocation5 + $0x1], 0  ;;  %s4441_s27 = smov 0   ;;  %s4443_s28 = smov 0  }
   0xf   :  { %s4445_s29 = smov 0   ;;  %s4447_s30 = smov 0  }
  0x10 LB: > { %s4378_s9 = smov [#allocation6]   ;;  %s4462_s11 = sadd.s32 4294967295, %s4376_s30   ;;  %s4376_s30 = sphi %s4447_s30, %s5350_s30   ;;  %s4372_s29 = sphi %s4445_s29, %s5349_s29   ;;  %s4368_s28 = sphi %s4443_s28, %s5348_s28   ;;  %s4364_s27 = sphi %s4441_s27, %s5347_s27  }
  0x11   : > { %s251_s10 = sshll.u32 %s4378_s9, 4  ;;  %p3215_p0 = scmp.ge.s32.totalorder %s4376_s30, 1  ;;  %s4467_s10 = int_to_ptr.vmem [resolvable:$true] %s251_s10 }
  0x12   : > { %p5302_p1 = scmp.eq.s32.totalorder %s4462_s11, 0  ;;  %p239_p2 = scmp.lt.s32.totalorder %s4376_s30, 3 }
  0x13   : > { %s4379_s13 = smov [#allocation9]   ;;  %s4380_s16 = smov [#allocation12]  }
  0x14   : > { %p4469_p3 = pnand %p3215_p0, %p239_p2  ;;  %s278_s14 = sshll.u32 %s4379_s13, 4  ;;  %s4482_s14 = int_to_ptr.vmem [resolvable:$true] %s278_s14 }
  0x15   : > { %s300_s17 = sshll.u32 %s4380_s16, 4  ;;  %s5314_s1 = sld [smem:[#allocation25_spill]]  ;;  %s4484_s17 = int_to_ptr.vmem [resolvable:$true] %s300_s17 }
  0x16   : > { %s5312_s12 = scalar_select %p4469_p3, 1, 0 }
  0x17   : > { %p3784_p5 = pneg %p4469_p3 }
  0x19   : > { %p4478_p6 = pnand %p3784_p5, %p5302_p1 }
  0x1b   : > { %s4066_s20 = scalar_lea.hbm %s5314_s1, 320  ;;  %p4494_p8 = pneg %p4478_p6 }
  0x1c   : > { %p4067_p7 = scmp.ne.s32.totalorder %s5314_s1, %s4066_s20  ;;  %p4073_p11 = scmp.lt.u32.totalorder %s4066_s20, %s5314_s1 }
  0x1e   : > { %p4069_p9 = pnand %p4494_p8, %p4067_p7 }
  0x20   : > { %p4070_p10 = pneg %p4069_p9 }
  0x22   : > { %p4075_p12 = pnand %p4073_p11, %p4070_p10 }
  0x24   : > { %4078 = shalt.err (!%p4075_p12)
}
  0x25   : > { %s4079_s26 = scalar_lea.vmem %s4467_s10, 320  ;;  %p4087_p5 = scmp.lt.s32.totalorder %s4467_s10, %s4467_s10 }
  0x26   : > { %p4080_p13 = scmp.ne.s32.totalorder %s4467_s10, %s4079_s26  ;;  %p4088_p4 = scmp.lt.s32.totalorder %s4079_s26, %s4079_s26 }
  0x28   : > { %p4082_p0 = pnand %p4080_p13, %p4494_p8  ;;  %p4089_p7 = por %p4088_p4, %p4087_p5 }
  0x2a   : > { %p4083_p2 = pneg %p4082_p0 }
  0x2c   : > { %p4090_p9 = pnand %p4089_p7, %p4083_p2 }
  0x2e   : > { %4093 = shalt.err (!%p4090_p9)
}
  0x2f   : > { %s5300_s9 = smov 64   ;;  %s5304_s13 = smov 4  }
  0x30   : > { %3787 = dma.hbm_to_vmem [thread:$0]  (!%p4478_p6), %s5314_s1, 320, %s4467_s10, [#allocation7], %s5300_s9, %s5300_s9, %s5304_s13  }
  0x31   : > { %s5316_s3 = sld [smem:[#allocation27_spill]] }
  0x37   : > { %s4094_s21 = scalar_lea.hbm %s5316_s3, 16 }
  0x38   : > { %p4095_p4 = scmp.ne.s32.totalorder %s5316_s3, %s4094_s21  ;;  %p4101_p12 = scmp.lt.u32.totalorder %s4094_s21, %s5316_s3 }
  0x3a   : > { %p4097_p10 = pnand %p4095_p4, %p4494_p8 }
  0x3c   : > { %p4098_p11 = pneg %p4097_p10 }
  0x3e   : > { %p4103_p13 = pnand %p4101_p12, %p4098_p11 }
  0x40   : > { %4106 = shalt.err (!%p4103_p13)
}
  0x41   : > { %s4107_s10 = scalar_lea.vmem %s4482_s14, 16  ;;  %s4114_s16 = scalar_lea.vmem %s4482_s14, 32 }
  0x42   : > { %p4108_p0 = scmp.ne.s32.totalorder %s4482_s14, %s4107_s10  ;;  %p4115_p7 = scmp.lt.s32.totalorder %s4482_s14, %s4482_s14 }
  0x43   : > { %p4116_p9 = scmp.lt.s32.totalorder %s4114_s16, %s4107_s10 }
  0x44   : > { %p4110_p2 = pnand %p4108_p0, %p4494_p8 }
  0x45   : > { %p4117_p4 = por %p4116_p9, %p4115_p7 }
  0x46   : > { %p4111_p5 = pneg %p4110_p2 }
  0x48   : > { %p4118_p10 = pnand %p4117_p4, %p4111_p5 }
  0x4a   : > { %4121 = shalt.err (!%p4118_p10)
}
  0x4b   : > { %3793 = dma.hbm_to_vmem [thread:$0]  (!%p4478_p6), %s5316_s3, 16, %s4482_s14, [#allocation10]  }
  0x4c   : > { %s4122_s22 = scalar_lea.hbm %s5296_s5, 16 }
  0x4d   : > { %p4123_p11 = scmp.ne.s32.totalorder %s5296_s5, %s4122_s22  ;;  %p4129_p0 = scmp.lt.u32.totalorder %s4122_s22, %s5296_s5 }
  0x4f   : > { %p4125_p12 = pnand %p4123_p11, %p4494_p8 }
  0x51   : > { %p4126_p13 = pneg %p4125_p12 }
  0x53   : > { %p4131_p2 = pnand %p4129_p0, %p4126_p13 }
  0x55   : > { %4134 = shalt.err (!%p4131_p2)
}
  0x56   : > { %s4135_s14 = scalar_lea.vmem %s4484_s17, 16  ;;  %s4142_s16 = scalar_lea.vmem %s4484_s17, 32 }
  0x57   : > { %p4136_p5 = scmp.ne.s32.totalorder %s4484_s17, %s4135_s14  ;;  %p4143_p4 = scmp.lt.s32.totalorder %s4484_s17, %s4484_s17 }
  0x58   : > { %p4144_p10 = scmp.lt.s32.totalorder %s4142_s16, %s4135_s14 }
  0x59   : > { %p4138_p7 = pnand %p4136_p5, %p4494_p8 }
  0x5a   : > { %p4145_p11 = por %p4144_p10, %p4143_p4 }
  0x5b   : > { %p4139_p9 = pneg %p4138_p7 }
  0x5d   : > { %p4146_p12 = pnand %p4145_p11, %p4139_p9 }
  0x5f   : > { %4149 = shalt.err (!%p4146_p12)
}
  0x60   : > { %3799 = dma.hbm_to_vmem [thread:$0]  (!%p4478_p6), %s5296_s5, 16, %s4484_s17, [#allocation13]  }
  0x61   : > { %s4383_s20 = smov [#allocation8]   ;;  %s4384_s22 = smov [#allocation11]  }
  0x62   : > { %s264_s21 = sshll.u32 %s4383_s20, 4  ;;  %s289_s24 = sshll.u32 %s4384_s22, 4  ;;  %s265_s21 = int_to_ptr.vmem [resolvable:$true] %s264_s21  ;;  %s290_s24 = int_to_ptr.vmem [resolvable:$true] %s289_s24 }
  0x63   : > { %s5317_s2 = sld [smem:[#allocation26_spill]] }
  0x69   : > { %s4150_s10 = scalar_lea.hbm %s5317_s2, 9216 }
  0x6a   : > { %p4151_p13 = scmp.ne.s32.totalorder %s5317_s2, %s4150_s10  ;;  %p4157_p5 = scmp.lt.u32.totalorder %s4150_s10, %s5317_s2 }
  0x6c   : > { %p4153_p0 = pnand %p4151_p13, %p4494_p8 }
  0x6e   : > { %p4154_p2 = pneg %p4153_p0 }
  0x70   : > { %p4159_p7 = pnand %p4157_p5, %p4154_p2 }
  0x72   : > { %4162 = shalt.err (!%p4159_p7)
}
  0x73   : > { %s4163_s17 = scalar_lea.vmem %s265_s21, 9216  ;;  %p4171_p11 = scmp.lt.s32.totalorder %s265_s21, %s265_s21 }
  0x74   : > { %p4164_p9 = scmp.ne.s32.totalorder %s265_s21, %s4163_s17  ;;  %p4172_p12 = scmp.lt.s32.totalorder %s4163_s17, %s4163_s17 }
  0x76   : > { %p4166_p4 = pnand %p4164_p9, %p4494_p8  ;;  %p4173_p1 = por %p4172_p12, %p4171_p11 }
  0x78   : > { %p4167_p10 = pneg %p4166_p4 }
  0x7a   : > { %p4174_p3 = pnand %p4173_p1, %p4167_p10 }
  0x7c   : > { %4177 = shalt.err (!%p4174_p3)
}
  0x7d   : > { %s5318_s19 = smov 64   ;;  %s5319_s4 = sld [smem:[#allocation28_spill]] }
  0x7e   : > { %3790 = dma.hbm_to_vmem [thread:$0]  (!%p4478_p6), %s5317_s2, 9216, %s265_s21, [#allocation7], %s5318_s19, %s5318_s19, %s5304_s13  }
  0x83   : > { %s4178_s26 = scalar_lea.hbm %s5319_s4, 16 }
  0x84   : > { %p4179_p1 = scmp.ne.s32.totalorder %s5319_s4, %s4178_s26  ;;  %p4185_p0 = scmp.lt.u32.totalorder %s4178_s26, %s5319_s4 }
  0x86   : > { %p4181_p3 = pnand %p4179_p1, %p4494_p8 }
  0x88   : > { %p4182_p13 = pneg %p4181_p3 }
  0x8a   : > { %p4187_p2 = pnand %p4185_p0, %p4182_p13 }
  0x8c   : > { %4190 = shalt.err (!%p4187_p2)
}
  0x8d   : > { %s4191_s17 = scalar_lea.vmem %s290_s24, 16  ;;  %s4198_s21 = scalar_lea.vmem %s290_s24, 32 }
  0x8e   : > { %p4192_p5 = scmp.ne.s32.totalorder %s290_s24, %s4191_s17  ;;  %p4199_p4 = scmp.lt.s32.totalorder %s290_s24, %s290_s24 }
  0x8f   : > { %p4200_p10 = scmp.lt.s32.totalorder %s4198_s21, %s4191_s17 }
  0x90   : > { %p4194_p7 = pnand %p4192_p5, %p4494_p8 }
  0x91   : > { %p4201_p11 = por %p4200_p10, %p4199_p4 }
  0x92   : > { %p4195_p9 = pneg %p4194_p7 }
  0x94   : > { %p4202_p12 = pnand %p4201_p11, %p4195_p9 }
  0x96   : > { %4205 = shalt.err (!%p4202_p12)
}
  0x97   : > { %3796 = dma.hbm_to_vmem [thread:$0]  (!%p4478_p6), %s5319_s4, 16, %s290_s24, [#allocation10]  }
  0x98   : > { %s4385_s22 = smov [#allocation14]   ;;  %s4206_s14 = scalar_lea.hbm %s5297_s6, 16 }
  0x99   : > { %s311_s25 = sshll.u32 %s4385_s22, 4  ;;  %p4207_p1 = scmp.ne.s32.totalorder %s5297_s6, %s4206_s14  ;;  %s312_s25 = int_to_ptr.vmem [resolvable:$true] %s311_s25 }
  0x9a   : > { %p4213_p0 = scmp.lt.u32.totalorder %s4206_s14, %s5297_s6 }
  0x9b   : > { %p4209_p3 = pnand %p4207_p1, %p4494_p8 }
  0x9d   : > { %p4210_p13 = pneg %p4209_p3 }
  0x9f   : > { %p4215_p2 = pnand %p4213_p0, %p4210_p13 }
  0xa1   : > { %4218 = shalt.err (!%p4215_p2)
}
  0xa2   : > { %s4219_s24 = scalar_lea.vmem %s312_s25, 16  ;;  %s4226_s9 = scalar_lea.vmem %s312_s25, 32 }
  0xa3   : > { %p4220_p5 = scmp.ne.s32.totalorder %s312_s25, %s4219_s24  ;;  %p4227_p4 = scmp.lt.s32.totalorder %s312_s25, %s312_s25 }
  0xa4   : > { %p4228_p10 = scmp.lt.s32.totalorder %s4226_s9, %s4219_s24 }
  0xa5   : > { %p4222_p7 = pnand %p4220_p5, %p4494_p8 }
  0xa6   : > { %p4229_p11 = por %p4228_p10, %p4227_p4 }
  0xa7   : > { %p4223_p9 = pneg %p4222_p7 }
  0xa9   : > { %p4230_p12 = pnand %p4229_p11, %p4223_p9 }
  0xab   : > { %4233 = shalt.err (!%p4230_p12)
}
  0xac   : > { %3802 = dma.hbm_to_vmem [thread:$0]  (!%p4478_p6), %s5297_s6, 16, %s312_s25, [#allocation13]  }
  0xad   : > { %s3214_s23 = sadd.s32 4294967294, %s4376_s30   ;;  %s4625_s15 = sadd.s32 1, %s4376_s30  }
  0xae   : > { %s34_s26 = ssub.s32 %s4376_s30, %s4625_s15  ;;  %s37_s10 = sadd.s32 1, %s4372_s29 }
  0xaf   : > { %p35_p8 = scmp.eq.s32.totalorder %s34_s26, 0  ;;  %p44_p1 = scmp.ne.s32.totalorder %s4372_s29, %s4368_s28 }
  0xb0   : > { %p45_p3 = scmp.eq.s32.totalorder %s4376_s30, 0  ;;  %p50_p13 = scmp.ne.s32.totalorder %s4368_s28, %s4364_s27 }
  0xb1   : > { %s4636_s14 = scalar_select %p35_p8, %s4372_s29, %s37_s10  }
  0xb2   : > { %p46_p0 = por %p45_p3, %p44_p1  ;;  %p5320_p2 = scmp.eq.s32.totalorder %s4462_s11, 0 }
  0xb3   : > { %p226_p6 = scmp.eq.s32.totalorder %s4462_s11, 1  ;;  %p232_p7 = scmp.eq.s32.totalorder %s3214_s23, 1 }
  0xb4   : > { %p4640_p5 = por %p5320_p2, %p50_p13  ;;  %p3820_p9 = scmp.lt.s32.totalorder %s4376_s30, 2 }
  0xb5   : > { %s4647_s25 = sand.u32 1, %s4372_s29   ;;  %p4649_p4 = por %p226_p6, %p44_p1 }
  0xb6   : > { %p4653_p10 = por %p232_p7, %p50_p13  ;;  %s3751_s21 = smul.u32 72, %s4647_s25 }
  0xb7   : > { %s5322_s18 = scalar_select %p4649_p4, 1, 0 }
  0xb8   : > { %s5323_s17 = scalar_select %p4653_p10, 1, 0 }
  0xb9   : > { %s3752_s24 = smul.u32 1152, %s4376_s30  ;;  %p4659_p11 = pnand %p3820_p9, %p46_p0 }
  0xba   : > { %s5325_s0 = sld [smem:[#allocation24_spill]]  ;;  %s326_s26 = scalar_lea.vmem [#allocation3], %s3751_s21 }
  0xbb   : > { %s333_s10 = sshll.u32 %s326_s26, 4  ;;  %s323_s13 = scalar_lea.sflag [#allocation4], %s4647_s25  ;;  %s4668_s10 = int_to_ptr.vmem [resolvable:$true] %s333_s10 }
  0xbc   : > { %p4236_p8 = pneg %p4659_p11 }
  0xc0   : > { %s4666_s23 = scalar_lea.hbm %s5325_s0, %s3752_s24  ;;  %s4239_s22 = scalar_lea.hbm %s5325_s0, 2304 }
  0xc1   : > { %s4234_s1 = scalar_lea.hbm %s4666_s23, 1152  ;;  %p4240_p13 = scmp.lt.u32.totalorder %s4666_s23, %s5325_s0 }
  0xc2   : > { %p4235_p12 = scmp.ne.s32.totalorder %s4666_s23, %s4234_s1  ;;  %p4241_p0 = scmp.lt.u32.totalorder %s4239_s22, %s4234_s1 }
  0xc3   : > { %p4243_p6 = scmp.lt.u32.totalorder %s4234_s1, %s4666_s23 }
  0xc4   : > { %p4237_p1 = pnand %p4236_p8, %p4235_p12  ;;  %p4242_p2 = por %p4241_p0, %p4240_p13 }
  0xc6   : > { %p4238_p3 = pneg %p4237_p1  ;;  %p4244_p7 = por %p4243_p6, %p4242_p2 }
  0xc8   : > { %p4245_p9 = pnand %p4244_p7, %p4238_p3 }
  0xca   : > { %4248 = shalt.err (!%p4245_p9)
}
  0xcb   : > { %s4249_s21 = scalar_lea.vmem %s4668_s10, 1152  ;;  %s4386_s26 = smov [#allocation3]  }
  0xcc   : > { %p4250_p12 = scmp.ne.s32.totalorder %s4668_s10, %s4249_s21  ;;  %s4254_s20 = sshll.u32 %s4386_s26, 4  ;;  %s4255_s20 = int_to_ptr.vmem [resolvable:$false] %s4254_s20 }
  0xcd   : > { %s4256_s2 = scalar_lea.vmem %s4255_s20, 2304  ;;  %p4257_p4 = scmp.lt.s32.totalorder %s4668_s10, %s4255_s20 }
  0xce   : > { %p4252_p1 = pnand %p4250_p12, %p4236_p8  ;;  %p4258_p13 = scmp.lt.s32.totalorder %s4256_s2, %s4249_s21 }
  0xd0   : > { %p4253_p10 = pneg %p4252_p1  ;;  %p4259_p0 = por %p4258_p13, %p4257_p4 }
  0xd2   : > { %p4260_p2 = pnand %p4259_p0, %p4253_p10 }
  0xd4   : > { %4263 = shalt.err (!%p4260_p2)
}
  0xd5   : > { %s5326_s1 = smov 4   ;;  %s3224_s3 = sshll.u32 %s4647_s25, 5 }
  0xd6   : > { %3806 = dma.hbm_to_vmem [thread:$0]  (!%p4659_p11), %s4666_s23, 1152, %s4668_s10, %s323_s13, %s5318_s19, %s5318_s19, %s5326_s1  }
  0xd7   : > { %s3512_s24 = sshll.u32 %s4376_s30, 9  ;;  %s347_s20 = scalar_lea.vmem [#allocation15], %s3224_s3 }
  0xd8   : > { %s4706_s26 = scalar_lea.hbm %s5298_s7, %s3512_s24  ;;  %s354_s2 = sshll.u32 %s347_s20, 4  ;;  %s4708_s2 = int_to_ptr.vmem [resolvable:$true] %s354_s2 }
  0xd9   : > { %s344_s0 = scalar_lea.sflag [#allocation16], %s4647_s25  ;;  %s4264_s4 = scalar_lea.hbm %s4706_s26, 512 }
  0xda   : > { %p4265_p4 = scmp.ne.s32.totalorder %s4706_s26, %s4264_s4  ;;  %s4269_s10 = scalar_lea.hbm %s5298_s7, 1024 }
  0xdb   : > { %p4270_p6 = scmp.lt.u32.totalorder %s4706_s26, %s5298_s7  ;;  %p4271_p7 = scmp.lt.u32.totalorder %s4269_s10, %s4264_s4 }
  0xdc   : > { %p4267_p10 = pnand %p4265_p4, %p4236_p8  ;;  %p4273_p12 = scmp.lt.u32.totalorder %s4264_s4, %s4706_s26 }
  0xdd   : > { %p4272_p9 = por %p4271_p7, %p4270_p6 }
  0xde   : > { %p4268_p3 = pneg %p4267_p10 }
  0xdf   : > { %p4274_p1 = por %p4273_p12, %p4272_p9 }
  0xe1   : > { %p4275_p13 = pnand %p4274_p1, %p4268_p3 }
  0xe3   : > { %4278 = shalt.err (!%p4275_p13)
}
  0xe4   : > { %s4279_s3 = scalar_lea.vmem %s4708_s2, 512  ;;  %s4387_s21 = smov [#allocation15]  }
  0xe5   : > { %p4280_p0 = scmp.ne.s32.totalorder %s4708_s2, %s4279_s3  ;;  %s4284_s20 = sshll.u32 %s4387_s21, 4  ;;  %s4285_s20 = int_to_ptr.vmem [resolvable:$false] %s4284_s20 }
  0xe6   : > { %s4286_s13 = scalar_lea.vmem %s4285_s20, 1024  ;;  %p4287_p10 = scmp.lt.s32.totalorder %s4708_s2, %s4285_s20 }
  0xe7   : > { %p4282_p2 = pnand %p4280_p0, %p4236_p8  ;;  %p4288_p6 = scmp.lt.s32.totalorder %s4286_s13, %s4279_s3 }
  0xe9   : > { %p4283_p4 = pneg %p4282_p2  ;;  %p4289_p7 = por %p4288_p6, %p4287_p10 }
  0xeb   : > { %p4290_p9 = pnand %p4289_p7, %p4283_p4 }
  0xed   : > { %4293 = shalt.err (!%p4290_p9)
}
  0xee   : > { %3809 = dma.hbm_to_vmem [thread:$0]  (!%p4659_p11), %s4706_s26, 512, %s4708_s2, %s344_s0, %s5318_s19, %s5318_s19, %s5326_s1  }
  0xef   : > { %p5327_p8 = scmp.ne.s32.totalorder %s5312_s12, 0 }
  0xf0   : > { %s4742_s4 = sand.u32 (!%p5327_p8), 1, %s4368_s28  }
  0xf1   : > { %366 = sbr.rel (%p5327_p8) target bundleno = 1002 (0x3ea), region = 52  ;;  %s369_s10 = scalar_lea.sflag (!%p5327_p8), [#allocation4], %s4742_s4 }
  0xf2   : > { %s3753_s23 = smul.u32 (!%p5327_p8), 72, %s4742_s4 }
  0xf4   : > { %s4746_s9 = scalar_lea.vmem (!%p5327_p8), [#allocation3], %s3753_s23 }
  0xf8   : > { %4339 = dma.done.wait (%p4640_p5), %s369_s10, 1152  }
  0xf9   : > { %4341 = vsyncadd (%p4640_p5), %s369_s10, 4294966144  ;;  %p5328_p11 = scmp.eq.s32.totalorder %s4462_s11, 0 }
  0xfb   : > { %4343 = dma.done.wait (%p5328_p11), [#allocation7], 9536   ;;  %p5329_p3 = pmov %p5328_p11 }
  0xfd   : > { %4345 = vsyncadd (%p5329_p3), [#allocation7], 4294957760  ;;  %p5330_p12 = pmov %p5329_p3 }
  0xfe   : > { %p5331_p1 = pmov %p5329_p3 }
  0xff   : > { %4347 = dma.done.wait (%p5330_p12), [#allocation10], 32  }
 0x100   : > { %4349 = vsyncadd (%p5331_p1), [#allocation10], 4294967264  ;;  %p5332_p13 = pmov %p5331_p1 }
 0x101   : > { %p5333_p0 = pmov %p5331_p1 }
 0x102   : > { %4351 = dma.done.wait (%p5332_p13), [#allocation13], 32  }
 0x103   : > { %4353 = vsyncadd (%p5333_p0), [#allocation13], 4294967264  ;;  %s3234_s0 = sshll.u32 %s4742_s4, 5  ;;  %s402_s12 = scalar_lea.sflag [#allocation16], %s4742_s4 }
 0x104   : > { %s4766_s19 = scalar_lea.vmem [#allocation15], %s3234_s0 }
 0x105   : > { %4355 = dma.done.wait (%p4640_p5), %s402_s12, 512  }
 0x106   : > { %4357 = vsyncadd (%p4640_p5), %s402_s12, 4294966784  ;;  %v444_v0 = vld [vmem:[%s4746_s9] sm:$0xf]  ;;  %v445_v1 = vld [vmem:[%s4746_s9 + $0x8] sm:$0xf]  ;;  %s4388_s16 = smov 4  }
 0x107   : > { %v446_v2 = vld [vmem:[%s4746_s9 + $0x10] sm:$0xf]  ;;  %vm460_vm0 = vsmask.f32 3328  ;;  %vm461_vm1 = vsmask.f32 7440  ;;  %v4775_v5 = vcombine.low %v444_v0, %v445_v1 }
 0x108   : > { %v478_v3 = vshrl.u32 %v445_v1, 16  ;;  %v481_v4 = vshll.u32 %v445_v1, 16  ;;  %v464_v6 = vshrl.u32 %v444_v0, 16  ;;  %v447_v7 = vld [vmem:[%s4746_s9 + $0x18] sm:$0xf]  ;;  %v467_v8 = vshll.u32 %v444_v0, 16  ;;  %vm4801_vm2 = vmor %vm460_vm0, %vm461_vm1 }
 0x109   : > { %v492_v9 = vshrl.u32 %v446_v2, 16  ;;  %v495_v10 = vshll.u32 %v446_v2, 16  ;;  %v506_v11 = vshrl.u32 %v447_v7, 16  ;;  %v3236_v12 = vld [vmem:[%s4746_s9 + $0x8] sm:$0xf]  ;;  %744 = vrot.lane.b32.xlu1 %v4775_v5, %s4388_s16  ;;  %v509_v16 = vshll.u32 %v447_v7, 16 }
 0x10a   : > { %v480_v13 = vrot.slane %v478_v3, 4  ;;  %v483_v14 = vrot.slane %v481_v4, 5  ;;  %v466_v15 = vrot.slane %v464_v6, 4  ;;  %v3237_v17 = vld [vmem:[%s4746_s9 + $0x10] sm:$0xf]  ;;  %v469_v18 = vrot.slane %v467_v8, 5 }
 0x10b   : > { %v494_v19 = vrot.slane %v492_v9, 4  ;;  %v497_v20 = vrot.slane %v495_v10, 5  ;;  %v3238_v21 = vld [vmem:[%s4746_s9 + $0x18] sm:$0xf]  ;;  %v508_v23 = vrot.slane %v506_v11, 4  ;;  %v4783_v24 = vcombine.low %v446_v2, %v447_v7  ;;  %s4389_s25 = smov 24  }
 0x10c   : > { %v484_v22 = vor.u32 %v483_v14, %v480_v13  ;;  %v607_v25 = vshrl.u32 %v3237_v17, 16  ;;  %v470_v26 = vor.u32 %v469_v18, %v466_v15  ;;  %v610_v27 = vshll.u32 %v3237_v17, 16  ;;  %v3239_v30 = vld [vmem:[%s4746_s9 + $0x20] sm:$0xf]  ;;  %v452_v35 = vld [vmem:[%s4746_s9 + $0x4] sm:$0x1] }
 0x10d   : > { %v3260_v28 = vcombine.low %v3236_v12, %v3237_v17  ;;  %v593_v29 = vshrl.u32 %v3236_v12, 16  ;;  %v511_v31 = vrot.slane %v509_v16, 5  ;;  %746 = vrot.lane.b32.xlu1 %v4783_v24, %s4388_s16  ;;  %v596_v33 = vshll.u32 %v3236_v12, 16  ;;  %v453_v40 = vld [vmem:[%s4746_s9 + $0xc] sm:$0x1]  ;;  %v3884_v62 = vld [vmem:[#allocation6 + $0x8] sm:$0xff]  }
 0x10e   : > { %v609_v32 = vrot.slane %v607_v25, 4  ;;  %v621_v34 = vshrl.u32 %v3238_v21, 16  ;;  %v471_v36 = vrot.slane %v470_v26, 4  ;;  %v612_v37 = vrot.slane %v610_v27, 5  ;;  %v454_v45 = vld [vmem:[%s4746_s9 + $0x14] sm:$0x1] }
 0x10f   : > { %780 = vrot.lane.b32.xlu0 %v3260_v28, %s4389_s25  ;;  %v4790_v38 = vrot.slane %v593_v29, 4  ;;  %v624_v39 = vshll.u32 %v3238_v21, 16  ;;  %v4793_v41 = vrot.slane %v596_v33, 5  ;;  %v635_v43 = vshrl.u32 %v3239_v30, 16  ;;  %v455_v50 = vld [vmem:[%s4746_s9 + $0x1c] sm:$0x1] }
 0x110   : > { %v623_v42 = vrot.slane %v621_v34, 4  ;;  %v638_v44 = vshll.u32 %v3239_v30, 16  ;;  %v613_v46 = vor.u32 %v612_v37, %v609_v32  ;;  %v3261_v48 = vcombine.low %v3238_v21, %v3239_v30  ;;  %v3883_v56 = vld [vmem:[#allocation6] sm:$0xff]   ;;  %v3246_v61 = vld [vmem:[%s4746_s9 + $0x1c] sm:$0x1]  ;;  %s4390_s1 = smov 8  }
 0x111   : > { %v626_v47 = vrot.slane %v624_v39, 5  ;;  %v473_v49 = vshll.u32 %v452_v35, 16  ;;  %v485_v51 = vrot.slane %v484_v22, 4  ;;  %v599_v52 = vor.u32 %v4793_v41, %v4790_v38  ;;  %3712 = vmatprep.subr.bf16.mxu0 %v3883_v56  ;;  %v3247_v7 = vld [vmem:[%s4746_s9 + $0x24] sm:$0x1]  ;;  %s4391_s26 = smov 12  }
 0x112   : > { %v637_v53 = vrot.slane %v635_v43, 4  ;;  %v487_v55 = vshll.u32 %v453_v40, 16  ;;  %v640_v57 = vrot.slane %v638_v44, 5  ;;  %782 = vrot.lane.b32.xlu1 %v3261_v48, %s4389_s25  ;;  %v498_v59 = vor.u32 %v497_v20, %v494_v19  ;;  %v4813_v9 = vld [vmem:[%s4746_s9 + $0x30] sm:$0xf]  ;;  %3713 = vmatpush3.bf16.msra.mxu0 %v3883_v56  ;;  %s4392_s2 = smov 32  }
 0x113   : > { %v475_v58 = vrot.slane %v473_v49, 5  ;;  %v501_v60 = vshll.u32 %v454_v45, 16  ;;  %v4807_v63 = vrot.slane %v613_v46, 4  ;;  %v512_v1 = vor.u32 %v511_v31, %v508_v23  ;;  %v458_v14 = vld [vmem:[%s4746_s9 + $0x34] sm:$0x1]  ;;  %3714 = vmatprep.subr.bf16.mxu0 %v3884_v62  ;;  %s3235_s24 = sshll.u32 %s4742_s4, 6 }
 0x114   : > { %v489_v0 = vrot.slane %v487_v55, 5  ;;  %v515_v2 = vshll.u32 %v455_v50, 16  ;;  %v499_v4 = vrot.slane %v498_v59, 4  ;;  %v627_v8 = vor.u32 %v626_v47, %v623_v42  ;;  %v4821_v19 = vld [vmem:[%s4746_s9 + $0x38] sm:$0xf]  ;;  %s5221_s22 = scalar_lea.vmem [#allocation17], %s3235_s24 }
 0x115   : > { %v476_v3 = vsel %vm4801_vm2, %v471_v36, %v475_v58  ;;  %v503_v6 = vrot.slane %v501_v60, 5  ;;  %v513_v11 = vrot.slane %v512_v1, 4  ;;  %v630_v13 = vshll.u32 %v3246_v61, 16  ;;  %v459_v20 = vld [vmem:[%s4746_s9 + $0x3c] sm:$0x1]  ;;  %s3513_s3 = sshll.u32 %s4462_s11, 10 }
 0x116   : > { %v490_v10 = vsel %vm4801_vm2, %v485_v51, %v489_v0  ;;  %v517_v12 = vrot.slane %v515_v2, 5  ;;  %v628_v17 = vrot.slane %v627_v8, 4  ;;  %v641_v18 = vor.u32 %v640_v57, %v637_v53  ;;  %v3244_v26 = vld [vmem:[%s4746_s9 + $0xc] sm:$0x1]  ;;  %v3245_v31 = vld [vmem:[%s4746_s9 + $0x14] sm:$0x1]  ;;  %3715 = vmatpush3.bf16.msra.mxu0 %v3884_v62  ;;  %s5238_s23 = scalar_lea.hbm %s5299_s8, %s3513_s3 }
 0x117   : > { %v3256_v15 = vcombine.low %v476_v3, %v490_v10  ;;  %v504_v16 = vsel %vm4801_vm2, %v499_v4, %v503_v6  ;;  %v632_v22 = vrot.slane %v630_v13, 5  ;;  %v644_v23 = vshll.u32 %v3247_v7, 16  ;;  %v4837_v40 = vld [vmem:[%s4746_s9 + $0x20] sm:$0xf]  ;;  %v456_v45 = vld [vmem:[%s4746_s9 + $0x24] sm:$0x1] }
 0x118   : > { %v518_v21 = vsel %vm4801_vm2, %v513_v11, %v517_v12  ;;  %v548_v25 = vshrl.u32 %v4813_v9, 16  ;;  %v642_v28 = vrot.slane %v641_v18, 4  ;;  %v551_v29 = vshll.u32 %v4813_v9, 16  ;;  %v4844_v50 = vld [vmem:[%s4746_s9 + $0x28] sm:$0xf]  ;;  %s3061_s21 = sshll.u32 %s5221_s22, 4  ;;  %s5242_s21 = int_to_ptr.vmem [resolvable:$true] %s3061_s21 }
 0x119   : > { %736 = vrot.lane.b32.xlu0 %v3256_v15, %s4390_s1  ;;  %v3257_v27 = vcombine.low %v504_v16, %v518_v21  ;;  %v557_v30 = vshll.u32 %v458_v14, 16  ;;  %v633_v32 = vsel %vm4801_vm2, %v628_v17, %v632_v22  ;;  %v646_v33 = vrot.slane %v644_v23, 5  ;;  %v457_v51 = vld [vmem:[%s4746_s9 + $0x2c] sm:$0x1]  ;;  %v4849_v57 = vld [vmem:[%s4746_s9 + $0x38] sm:$0xf] }
 0x11a   : > { %v550_v34 = vrot.slane %v548_v25, 4  ;;  %v562_v35 = vshrl.u32 %v4821_v19, 16  ;;  %v600_v36 = vrot.slane %v599_v52, 4  ;;  %v553_v37 = vrot.slane %v551_v29, 5  ;;  %v4860_v3 = vld [vmem:[%s4746_s9 + $0x40] sm:$0xf] }
 0x11b   : > { %754 = vrot.lane.b32.xlu1 %v3257_v27, %s4391_s26  ;;  %v565_v38 = vshll.u32 %v4821_v19, 16  ;;  %v571_v39 = vshll.u32 %v459_v20, 16  ;;  %v647_v41 = vsel %vm4801_vm2, %v642_v28, %v646_v33  ;;  %v602_v43 = vshll.u32 %v3244_v26, 16  ;;  %v3250_v10 = vld [vmem:[%s4746_s9 + $0x3c] sm:$0x1]  ;;  %s3048_s11 = scalar_lea.sflag [#allocation5], %s4742_s4 }
 0x11c   : > { %v564_v42 = vrot.slane %v562_v35, 4  ;;  %v616_v44 = vshll.u32 %v3245_v31, 16  ;;  %v3265_v46 = vcombine.low %v633_v32, %v647_v41  ;;  %v554_v47 = vor.u32 %v553_v37, %v550_v34  ;;  %v3251_v13 = vld [vmem:[%s4746_s9 + $0x44] sm:$0x1]  ;;  %v4872_v18 = vld [vmem:[%s4746_s9 + $0x28] sm:$0xf] }
 0x11d   : > { %738 = vrot.lane.b32.xlu0 %v3257_v27, %s4390_s1  ;;  %v559_v48 = vrot.slane %v557_v30, 5  ;;  %v567_v49 = vrot.slane %v565_v38, 5  ;;  %v573_v52 = vrot.slane %v571_v39, 5  ;;  %v604_v53 = vrot.slane %v602_v43, 5  ;;  %v4876_v25 = vld [vmem:[%s4746_s9 + $0x30] sm:$0xf] }
 0x11e   : > { %v618_v55 = vrot.slane %v616_v44, 5  ;;  %v520_v56 = vshrl.u32 %v4837_v40, 16  ;;  %v555_v58 = vrot.slane %v554_v47, 4  ;;  %v523_v60 = vshll.u32 %v4837_v40, 16  ;;  %v3248_v38 = vld [vmem:[%s4746_s9 + $0x2c] sm:$0x1] }
 0x11f   : > { %802 = vrot.lane.b32.xlu1 %v3265_v46, %s4392_s2  ;;  %v568_v59 = vor.u32 %v567_v49, %v564_v42  ;;  %v529_v61 = vshll.u32 %v456_v45, 16  ;;  %v605_v62 = vsel %vm4801_vm2, %v600_v36, %v604_v53  ;;  %v534_v2 = vshrl.u32 %v4844_v50, 16  ;;  %v3249_v44 = vld [vmem:[%s4746_s9 + $0x34] sm:$0x1]  ;;  %s4294_s10 = scalar_lea.vmem %s5242_s21, 1024  ;;  %p5344_p2 = scmp.ne.s32.totalorder %s5322_s18, 0 }
 0x120   : > { %v619_v0 = vsel %vm4801_vm2, %v4807_v63, %v618_v55  ;;  %v522_v1 = vrot.slane %v520_v56, 4  ;;  %v560_v4 = vsel %vm4801_vm2, %v555_v58, %v559_v48  ;;  %v525_v8 = vrot.slane %v523_v60, 5  ;;  %v3885_v58 = vld [vmem:[#allocation6 + $0x10] ss:$0 sps:$4 sm:$0x33]   ;;  %p4295_p5 = scmp.ne.s32.totalorder %s5242_s21, %s4294_s10  ;;  %s4394_s9 = smov [#allocation17]  }
 0x121   : > { %752 = vrot.lane.b32.xlu0 %v3256_v15, %s4391_s26  ;;  %v569_v6 = vrot.slane %v568_v59, 4  ;;  %v3264_v7 = vcombine.low %v605_v62, %v619_v0  ;;  %v536_v11 = vrot.slane %v534_v2, 4  ;;  %v537_v12 = vshll.u32 %v4844_v50, 16  ;;  %s4298_s0 = sshll.u32 %s4394_s9, 4  ;;  %s4299_s0 = int_to_ptr.vmem [resolvable:$false] %s4298_s0 }
 0x122   : > { %v543_v63 = vshll.u32 %v457_v51, 16  ;;  %v526_v16 = vor.u32 %v525_v8, %v522_v1  ;;  %v531_v17 = vrot.slane %v529_v61, 5  ;;  %v677_v15 = vshrl.u32 %v4849_v57, 16  ;;  %p4296_p4 = pnand %p4295_p5, %p5344_p2  ;;  %s4300_s12 = scalar_lea.vmem %s4299_s0, 2048 }
 0x123   : > { %v574_v14 = vsel %vm4801_vm2, %v569_v6, %v573_v52  ;;  %v539_v21 = vrot.slane %v537_v12, 5  ;;  %v680_v23 = vshll.u32 %v4849_v57, 16  ;;  %v691_v28 = vshrl.u32 %v4860_v3, 16  ;;  %p4301_p6 = scmp.lt.s32.totalorder %s5242_s21, %s4299_s0  ;;  %p4302_p7 = scmp.lt.s32.totalorder %s4300_s12, %s4294_s10 }
 0x124   : > { %v3259_v20 = vcombine.low %v560_v4, %v574_v14  ;;  %v545_v22 = vrot.slane %v543_v63, 5  ;;  %v527_v26 = vrot.slane %v526_v16, 4  ;;  %v679_v27 = vrot.slane %v677_v15, 4  ;;  %p4297_p10 = pneg %p4296_p4 }
 0x125   : > { %800 = vrot.lane.b32.xlu0 %v3264_v7, %s4392_s2  ;;  %v694_v29 = vshll.u32 %v4860_v3, 16  ;;  %v4884_v30 = vcombine.low %v4813_v9, %v4821_v19  ;;  %v540_v31 = vor.u32 %v539_v21, %v536_v11  ;;  %v682_v32 = vrot.slane %v680_v23, 5  ;;  %p4303_p9 = por %p4302_p7, %p4301_p6 }
 0x126   : > { %742 = vrot.lane.b32.xlu1 %v3259_v20, %s4390_s1  ;;  %v686_v33 = vshll.u32 %v3250_v10, 16  ;;  %v532_v34 = vsel %vm4801_vm2, %v527_v26, %v531_v17  ;;  %v693_v35 = vrot.slane %v691_v28, 4  ;;  %v700_v37 = vshll.u32 %v3251_v13, 16 }
 0x127   : > { %v696_v36 = vrot.slane %v694_v29, 5  ;;  %v541_v39 = vrot.slane %v540_v31, 4  ;;  %v683_v41 = vor.u32 %v682_v32, %v679_v27  ;;  %v649_v43 = vshrl.u32 %v4872_v18, 16  ;;  %p4304_p8 = pnand %p4303_p9, %p4297_p10 }
 0x128   : > { %v688_v42 = vrot.slane %v686_v33, 5  ;;  %v702_v46 = vrot.slane %v700_v37, 5  ;;  %v652_v9 = vshll.u32 %v4872_v18, 16  ;;  %v663_v19 = vshrl.u32 %v4876_v25, 16 }
 0x129   : > { %v697_v45 = vor.u32 %v696_v36, %v693_v35  ;;  %v546_v47 = vsel %vm4801_vm2, %v541_v39, %v545_v22  ;;  %v684_v48 = vrot.slane %v683_v41, 4  ;;  %v651_v49 = vrot.slane %v649_v43, 4 }
 0x12a   : > { %750 = vrot.lane.b32.xlu1 %v4884_v30, %s4388_s16  ;;  %v666_v51 = vshll.u32 %v4876_v25, 16  ;;  %v3258_v52 = vcombine.low %v532_v34, %v546_v47  ;;  %v654_v55 = vrot.slane %v652_v9, 5  ;;  %v665_v56 = vrot.slane %v663_v19, 4 }
 0x12b   : > { %v698_v53 = vrot.slane %v697_v45, 4  ;;  %v658_v60 = vshll.u32 %v3248_v38, 16  ;;  %v4901_v61 = vcombine.low %v4837_v40, %v4844_v50  ;;  %v672_v0 = vshll.u32 %v3249_v44, 16 }
 0x12c   : > { %v668_v59 = vrot.slane %v666_v51, 5  ;;  %740 = vrot.lane.b32.xlu0 %v3258_v52, %s4390_s1  ;;  %v655_v62 = vor.u32 %v654_v55, %v651_v49  ;;  %v3263_v1 = vcombine.low %v4849_v57, %v4860_v3  ;;  %v689_v4 = vsel %vm4801_vm2, %v684_v48, %v688_v42 }
 0x12d   : > { %v703_v6 = vsel %vm4801_vm2, %v698_v53, %v702_v46  ;;  %v660_v8 = vrot.slane %v658_v60, 5  ;;  %v674_v10 = vrot.slane %v672_v0, 5  ;;  %vm896_vm3 = vcmask 1041408   ;;  %v3886_v0 = vld [vmem:[#allocation8 + $0xc0] sm:$0xff]  }
 0x12e   : > { %758 = vrot.lane.b32.xlu1 %v3259_v20, %s4391_s26  ;;  %v669_v2 = vor.u32 %v668_v59, %v665_v56  ;;  %v656_v7 = vrot.slane %v655_v62, 4  ;;  %3750 = vmatprep.subr.msk.bf16.mxu0 %vm896_vm3, %v3885_v58  ;;  %v898_v50 = vsel %vm896_vm3, %v3885_v58, 0  ;;  %v3267_v57 = vcombine.low %v689_v4, %v703_v6  ;;  %v1043_v6 = vld [vmem:[#allocation2 + $0x18] sm:$0x10]  ;;  %v3941_v4 = vld [vmem:[#allocation8 + $0x140] sm:$0xff]  }
 0x12f   : > { %3717 = vmatpush3.bf16.msra.mxu0 %v898_v50  ;;  %v3262_v3 = vcombine.low %v4872_v18, %v4876_v25  ;;  %vm812_vm4 = vcmask 64512   ;;  %vm821_vm5 = vcmask 97280   ;;  %vm830_vm6 = vcmask 130048  }
 0x130   : > { %748 = vrot.lane.b32.xlu0 %v4901_v61, %s4388_s16  ;;  %v670_v40 = vrot.slane %v669_v2, 4  ;;  %v661_v11 = vsel %vm4801_vm2, %v656_v7, %v660_v8  ;;  %vm835_vm7 = vcmask 162816   ;;  %vm844_vm8 = vcmask 195584   ;;  %3580 = vmatprep.subr.bf16.mxu0 %v3886_v0  ;;  %v1016_v2 = vld [vmem:[#allocation2 + $0x18] sm:$0x1]  ;;  %v3888_v7 = vld [vmem:[#allocation8 + $0xc8] sm:$0xff]  }
 0x131   : > { %vm853_vm9 = vcmask 228352   ;;  %vm858_vm10 = vcmask 261120   ;;  %vm887_vm11 = vcmask 293888   ;;  %vm1007_vm12 = vcmask 1040384   ;;  %v3915_v0 = vld [vmem:[#allocation8 + $0x70] sm:$0xff]  }
 0x132   : > { %786 = vrot.lane.b32.xlu1 %v3263_v1, %s4389_s25  ;;  %v675_v12 = vsel %vm4801_vm2, %v670_v40, %v674_v10  ;;  %v3887_v1 = vld [vmem:[#allocation8 + $0x80] sm:$0xff]   ;;  %vm1008_vm13 = vsmask.f32 256  ;;  %vm1034_vm14 = vcmask 1044484   ;;  %vm1035_vm0 = vsmask.f32 7954 }
 0x133   : > { %v3266_v63 = vcombine.low %v661_v11, %v675_v12  ;;  %vm4959_vm15 = vmand %vm1007_vm12, %vm1008_vm13  ;;  %v3889_v40 = vld [vmem:[#allocation8 + $0x88] sm:$0xff]   ;;  %v1037_v11 = vld [vmem:[#allocation2 + $0x8] sm:$0x10]  ;;  %vm1133_vm3 = vcmask 1044480  }
 0x134   : > { %756 = vrot.lane.b32.xlu0 %v3258_v52, %s4391_s26  ;;  %v1017_v8 = vsel %vm4959_vm15, 0, %v1016_v2  ;;  %vm4965_vm1 = vmand %vm1034_vm14, %vm1035_vm0  ;;  %v3891_v12 = vld [vmem:[#allocation8] sm:$0xff]   ;;  %v3922_v2 = vld [vmem:[#allocation8 + $0x78] sm:$0xff]  }
 0x135   : > { %1018 = vst [vmem:[#allocation2 + $0x18] sm:$0x1] %v1017_v8  ;;  %v1044_v50 = vsel %vm4965_vm1, 0, %v1043_v6  ;;  %v3924_v6 = vld [vmem:[#allocation8 + $0x1c0] sm:$0xff]  }
 0x136   : > { %806 = vrot.lane.b32.xlu1 %v3267_v57, %s4392_s2  ;;  %1045 = vst [vmem:[#allocation2 + $0x18] sm:$0x10] %v1044_v50  ;;  %v3890_v57 = vld [vmem:[#allocation8 + $0x40] sm:$0xff]  }
 0x137   : > { %3540 = vmatprep.subr.bf16.mxu1 %v3890_v57  ;;  %v4999_v8 = vld [vmem:[#allocation9] ss:$0 sm:$0xff] }
 0x138   : > { %784 = vrot.lane.b32.xlu0 %v3262_v3, %s4389_s25  ;;  %v1010_v3 = vld [vmem:[#allocation2 + $0x8] sm:$0x1]  ;;  %3541 = vmatpush3.bf16.msra.mxu1 %v3891_v12 }
 0x13c   : > { %804 = vrot.lane.b32.xlu0 %v3266_v63, %s4392_s2  ;;  %v1011_v63 = vsel %vm4959_vm15, 0, %v1010_v3 }
 0x13d   : > { %1012 = vst [vmem:[#allocation2 + $0x8] sm:$0x1] %v1011_v63 }
 0x17b   : > { %v745_v13 = vpop.permute.xlu1 %744 }
 0x17f   : > { %v747_v14 = vpop.permute.xlu1 %746 }
 0x181   : > { %v781_v16 = vpop.permute.xlu0 %780 }
 0x184   : > { %v783_v17 = vpop.permute.xlu1 %782 }
 0x18b   : > { %v737_v15 = vpop.permute.xlu0 %736 }
 0x18c   : > { %v814_v18 = vsel %vm812_vm4, %v4775_v5, %v737_v15 }
 0x18d   : > { %v755_v20 = vpop.permute.xlu1 %754  ;;  %v823_v22 = vsel %vm821_vm5, %v814_v18, %v745_v13  ;;  %v1013_v18 = vld [vmem:[#allocation2 + $0x10] sm:$0x1] }
 0x18e   : > { %v831_v5 = vsel %vm830_vm6, %v823_v22, %v745_v13  ;;  %v1038_v13 = vsel %vm4965_vm1, 0, %v1037_v11 }
 0x18f   : > { %v739_v21 = vpop.permute.xlu0 %738  ;;  %1039 = vst [vmem:[#allocation2 + $0x8] sm:$0x10] %v1038_v13 }
 0x190   : > { %v816_v23 = vsel %vm812_vm4, %v4783_v24, %v739_v21  ;;  %v1014_v21 = vsel %vm4959_vm15, 0, %v1013_v18 }
 0x191   : > { %v825_v25 = vsel %vm821_vm5, %v816_v23, %v747_v14  ;;  %v803_v27 = vpop.permute.xlu1 %802  ;;  %v3892_v23 = vld [vmem:[#allocation8 + $0xd0] sm:$0xff]   ;;  %1015 = vst [vmem:[#allocation2 + $0x10] sm:$0x1] %v1014_v21 }
 0x192   : > { %v832_v26 = vsel %vm830_vm6, %v825_v25, %v747_v14  ;;  %v1019_v14 = vld [vmem:[#allocation2 + $0x20] sm:$0x1]  ;;  %v3893_v25 = vld [vmem:[#allocation8 + $0x90] sm:$0xff]  }
 0x193   : > { %v839_v28 = vsel %vm835_vm7, %v832_v26, %v755_v20  ;;  %v753_v29 = vpop.permute.xlu0 %752  ;;  %v1040_v20 = vld [vmem:[#allocation2 + $0x10] sm:$0x10]  ;;  %v3894_v26 = vld [vmem:[#allocation8 + $0x48] sm:$0xff]  }
 0x194   : > { %v848_v31 = vsel %vm844_vm8, %v839_v28, %v783_v17  ;;  %v837_v32 = vsel %vm835_vm7, %v831_v5, %v753_v29  ;;  %v1041_v22 = vsel %vm4965_vm1, 0, %v1040_v20  ;;  %v3896_v28 = vld [vmem:[#allocation8 + $0xd8] sm:$0xff]   ;;  %3542 = vmatprep.subr.bf16.mxu1 %v3894_v26  ;;  %v3898_v29 = vld [vmem:[#allocation8 + $0x50] sm:$0xff]  }
 0x195   : > { %v846_v33 = vsel %vm844_vm8, %v837_v32, %v781_v16  ;;  %v855_v24 = vsel %vm853_vm9, %v848_v31, %v783_v17  ;;  %v1020_v17 = vsel %vm4959_vm15, 0, %v1019_v14  ;;  %1042 = vst [vmem:[#allocation2 + $0x10] sm:$0x10] %v1041_v22  ;;  %v3897_v5 = vld [vmem:[#allocation8 + $0x98] sm:$0xff]   ;;  %v3899_v31 = vld [vmem:[#allocation8 + $0x10] sm:$0xff]   ;;  %v3900_v32 = vld [vmem:[#allocation8 + $0xe0] sm:$0xff]  }
 0x196   : > { %v854_v34 = vsel %vm853_vm9, %v846_v33, %v781_v16  ;;  %v862_v38 = vsel %vm858_vm10, %v855_v24, %v803_v27  ;;  %v1046_v16 = vld [vmem:[#allocation2 + $0x20] sm:$0x10]  ;;  %1021 = vst [vmem:[#allocation2 + $0x20] sm:$0x1] %v1020_v17  ;;  %v3895_v27 = vld [vmem:[#allocation8 + $0x8] sm:$0xff]   ;;  %v3902_v33 = vld [vmem:[#allocation8 + $0x58] sm:$0xff]  }
 0x197   : > { %v801_v35 = vpop.permute.xlu0 %800  ;;  %v1047_v15 = vsel %vm4965_vm1, 0, %v1046_v16  ;;  %3543 = vmatpush3.bf16.msra.mxu1 %v3895_v27  ;;  %v3901_v24 = vld [vmem:[#allocation8 + $0xa0] sm:$0xff]  }
 0x198   : > { %v743_v36 = vpop.permute.xlu1 %742  ;;  %v860_v37 = vsel %vm858_vm10, %v854_v34, %v801_v35  ;;  %1048 = vst [vmem:[#allocation2 + $0x20] sm:$0x10] %v1047_v15  ;;  %3544 = vmatprep.subr.bf16.mxu1 %v3898_v29  ;;  %v4393_v34 = vmov 0   ;;  %v3903_v35 = vld [vmem:[#allocation8 + $0x18] sm:$0xff]  }
 0x199   : > { %3718 = vmatprep.mubr.msk.bf16.mxu0 %vm887_vm11, %v860_v37  ;;  %v820_v43 = vsel %vm812_vm4, %v4884_v30, %v743_v36  ;;  %1003 = vst [vmem:[#allocation2] sm:$0xff] %v4393_v34  ;;  %1005 = vst [vmem:[#allocation2 + $0x48] sm:$0xff] %v4393_v34  ;;  %v3904_v36 = vld [vmem:[#allocation8 + $0xe8] sm:$0xff]  }
 0x19a   : > { %3719 = vmatmul.mubr.msk.bf16.vlgmr.msra.gmra.mrb[0].mxu0 %vm887_vm11, %v862_v38  ;;  %v3905_v37 = vld [vmem:[#allocation8 + $0xa8] sm:$0xff]   ;;  %v3906_v38 = vld [vmem:[#allocation8 + $0x60] sm:$0xff]  }
 0x19b   : > { %3581 = vmatpush3.bf16.msra.mxu0 %v3887_v1  ;;  %3545 = vmatpush3.bf16.msra.mxu1 %v3899_v31  ;;  %v3916_v1 = vld [vmem:[#allocation8 + $0x30] sm:$0xff]  }
 0x19c   : > { %v751_v39 = vpop.permute.xlu1 %750  ;;  %3582 = vmatprep.subr.bf16.mxu0 %v3888_v7  ;;  %3546 = vmatprep.subr.bf16.mxu1 %v3902_v33  ;;  %v3923_v7 = vld [vmem:[#allocation8 + $0x38] sm:$0xff]  }
 0x19d   : > { %v829_v45 = vsel %vm821_vm5, %v820_v43, %v751_v39  ;;  %v1028_v43 = vld [vmem:[#allocation2 + $0x38] sm:$0x1] }
 0x19e   : > { %v741_v41 = vpop.permute.xlu0 %740  ;;  %v834_v48 = vsel %vm830_vm6, %v829_v45, %v751_v39  ;;  %v3907_v39 = vld [vmem:[#allocation8 + $0x20] sm:$0xff]   ;;  %v3910_v45 = vld [vmem:[#allocation8 + $0x68] sm:$0xff]  }
 0x19f   : > { %v818_v46 = vsel %vm812_vm4, %v4901_v61, %v741_v41  ;;  %3583 = vmatpush3.bf16.msra.mxu0 %v3889_v40  ;;  %3547 = vmatpush3.bf16.msra.mxu1 %v3903_v35  ;;  %v3908_v41 = vld [vmem:[#allocation8 + $0xf0] sm:$0xff]   ;;  %v5001_v40 = vld [vmem:[#allocation11] ss:$0 sm:$0xff] }
 0x1a0   : > { %v759_v42 = vpop.permute.xlu1 %758  ;;  %3584 = vmatprep.subr.bf16.mxu0 %v3892_v23  ;;  %3548 = vmatprep.subr.bf16.mxu1 %v3906_v38  ;;  %v1168_v50 = vld [vmem:[#allocation2] sm:$0x1f] }
 0x1a1   : > { %v843_v53 = vsel %vm835_vm7, %v834_v48, %v759_v42  ;;  %v3909_v42 = vld [vmem:[#allocation8 + $0xb0] sm:$0xff]   ;;  %v3277_v16 = vcombine.low %v1168_v50, %v1168_v50  ;;  %v3278_v34 = vcombine.high %v1168_v50, %v1168_v50 }
 0x1a2   : > { %v749_v44 = vpop.permute.xlu0 %748 }
 0x1a3   : > { %v827_v9 = vsel %vm821_vm5, %v818_v46, %v749_v44  ;;  %3585 = vmatpush3.bf16.msra.mxu0 %v3893_v25  ;;  %3549 = vmatpush3.bf16.msra.mxu1 %v3907_v39  ;;  %v1029_v46 = vsel %vm4959_vm15, 0, %v1028_v43  ;;  %v1217_v26 = vshrl.u32 %v3277_v16, 16  ;;  %vm1134_vm5 = vsmask.f32 4354  ;;  %v1675_v39 = vld [vmem:[#allocation2 + $0x48] sm:$0x1f] }
 0x1a4   : > { %v787_v47 = vpop.permute.xlu1 %786  ;;  %v833_v49 = vsel %vm830_vm6, %v827_v9, %v749_v44  ;;  %3586 = vmatprep.subr.bf16.mxu0 %v3896_v28  ;;  %v1055_v44 = vld [vmem:[#allocation2 + $0x38] sm:$0x10]  ;;  %1030 = vst [vmem:[#allocation2 + $0x38] sm:$0x1] %v1029_v46  ;;  %3550 = vmatprep.subr.bf16.mxu1 %v3910_v45  ;;  %vm5011_vm6 = vmand %vm1133_vm3, %vm1134_vm5  ;;  %v1328_v45 = vld [vmem:[#allocation2] sm:$0x1e] }
 0x1a5   : > { %v852_v55 = vsel %vm844_vm8, %v843_v53, %v787_v47  ;;  %v1056_v9 = vsel %vm4965_vm1, 0, %v1055_v44  ;;  %v1219_v38 = vrot.slane %v1217_v26, 4 }
 0x1a6   : > { %v757_v19 = vpop.permute.xlu0 %756  ;;  %v857_v60 = vsel %vm853_vm9, %v852_v55, %v787_v47  ;;  %v1049_v47 = vld [vmem:[#allocation2 + $0x28] sm:$0x10]  ;;  %1057 = vst [vmem:[#allocation2 + $0x38] sm:$0x10] %v1056_v9  ;;  %v1025_v55 = vld [vmem:[#allocation2 + $0x30] sm:$0x1] }
 0x1a7   : > { %v841_v51 = vsel %vm835_vm7, %v833_v49, %v757_v19  ;;  %3587 = vmatpush3.bf16.msra.mxu0 %v3897_v5  ;;  %v1022_v19 = vld [vmem:[#allocation2 + $0x28] sm:$0x1]  ;;  %v1050_v49 = vsel %vm4965_vm1, 0, %v1049_v47  ;;  %v1220_v5 = vshll.u32 %v3277_v16, 16  ;;  %vm1376_vm7 = vcmask 1042432  }
 0x1a8   : > { %v807_v56 = vpop.permute.xlu1 %806  ;;  %3588 = vmatprep.subr.bf16.mxu0 %v3900_v32  ;;  %v1023_v48 = vsel %vm4959_vm15, 0, %v1022_v19  ;;  %1051 = vst [vmem:[#allocation2 + $0x28] sm:$0x10] %v1050_v49  ;;  %v1142_v32 = vld [vmem:[#allocation2 + $0x18] sm:$0x1f] }
 0x1a9   : > { %v866_v62 = vsel %vm858_vm10, %v857_v60, %v807_v56  ;;  %1024 = vst [vmem:[#allocation2 + $0x28] sm:$0x1] %v1023_v48  ;;  %v1052_v56 = vld [vmem:[#allocation2 + $0x30] sm:$0x10]  ;;  %v3911_v60 = vld [vmem:[#allocation8 + $0x28] sm:$0xff]   ;;  %v1222_v46 = vrot.slane %v1220_v5, 5 }
 0x1aa   : > { %v785_v52 = vpop.permute.xlu0 %784  ;;  %3551 = vmatpush3.bf16.msra.mxu1 %v3911_v60  ;;  %v1136_v19 = vld [vmem:[#allocation2 + $0x8] sm:$0x1f]  ;;  %v3294_v60 = vcombine.high %v1328_v45, %v1328_v45 }
 0x1ab   : > { %v850_v30 = vsel %vm844_vm8, %v841_v51, %v785_v52  ;;  %3589 = vmatpush3.bf16.msra.mxu0 %v3901_v24  ;;  %v1031_v51 = vld [vmem:[#allocation2 + $0x40] sm:$0x1]  ;;  %3552 = vmatprep.subr.bf16.mxu1 %v3915_v0  ;;  %v1223_v0 = vor.u32 %v1222_v46, %v1219_v38  ;;  %vm1377_vm8 = vcmask 1046532  }
 0x1ac   : > { %v856_v58 = vsel %vm853_vm9, %v850_v30, %v785_v52  ;;  %3590 = vmatprep.subr.bf16.mxu0 %v3904_v36  ;;  %v1058_v52 = vld [vmem:[#allocation2 + $0x40] sm:$0x10]  ;;  %v1032_v53 = vsel %vm4959_vm15, 0, %v1031_v51  ;;  %v1381_v50 = vrot.slane %v3294_v60, 5  ;;  %vm5023_vm9 = vmor %vm1376_vm7, %vm1377_vm8 }
 0x1ad   : > { %v1059_v30 = vsel %vm4965_vm1, 0, %v1058_v52  ;;  %1033 = vst [vmem:[#allocation2 + $0x40] sm:$0x1] %v1032_v53  ;;  %v1145_v51 = vld [vmem:[#allocation2 + $0x20] sm:$0x1f] }
 0x1ae   : > { %v805_v59 = vpop.permute.xlu0 %804  ;;  %1060 = vst [vmem:[#allocation2 + $0x40] sm:$0x10] %v1059_v30  ;;  %3553 = vmatpush3.bf16.msra.mxu1 %v3916_v1  ;;  %v3371_v30 = vcombine.low %v1675_v39, %v1675_v39  ;;  %v1226_v1 = vshll.u32 %v3278_v34, 16 }
 0x1af   : > { %v864_v61 = vsel %vm858_vm10, %v856_v58, %v805_v59  ;;  %3591 = vmatpush3.bf16.msra.mxu0 %v3905_v37  ;;  %v1026_v58 = vsel %vm4959_vm15, 0, %v1025_v55  ;;  %v1053_v59 = vsel %vm4965_vm1, 0, %v1052_v56  ;;  %3554 = vmatprep.subr.bf16.mxu1 %v3922_v2 }
 0x1b0   : > { %3722 = vmatprep.mubr.msk.bf16.mxu0 %vm887_vm11, %v864_v61  ;;  %3592 = vmatprep.subr.bf16.mxu0 %v3908_v41  ;;  %v3912_v61 = vld [vmem:[#allocation8 + $0xf8] sm:$0xff]   ;;  %1027 = vst [vmem:[#allocation2 + $0x30] sm:$0x1] %v1026_v58  ;;  %1054 = vst [vmem:[#allocation2 + $0x30] sm:$0x10] %v1053_v59  ;;  %v3293_v59 = vcombine.low %v1328_v45, %v1328_v45 }
 0x1b1   : > { %3723 = vmatmul.mubr.msk.bf16.gmra.mrb[4].mxu0 %vm887_vm11, %v866_v62  ;;  %v3913_v62 = vld [vmem:[#allocation8 + $0xb8] sm:$0xff]  }
 0x1b2   : > { %3555 = vmatpush3.bf16.msra.mxu1 %v3923_v7  ;;  %v1139_v58 = vld [vmem:[#allocation2 + $0x10] sm:$0x1f]  ;;  %v3372_v7 = vcombine.high %v1675_v39, %v1675_v39 }
 0x1b3   : > { %3593 = vmatpush3.bf16.msra.mxu0 %v3909_v42  ;;  %3620 = vmatprep.subr.bf16.mxu1 %v3941_v4  ;;  %v1815_v4 = vshrl.u32 %v3371_v30, 16 }
 0x1b4   : > { %3594 = vmatprep.subr.bf16.mxu0 %v3912_v61 }
 0x1b7   : > { %3595 = vmatpush3.bf16.msra.mxu0 %v3913_v62 }
 0x1b8   : > { %3660 = vmatprep.subr.bf16.mxu0 %v3924_v6 }
 0x26d   : > { %v3720_v10 = vpop.f32.mrb[0].mxu0 }
 0x26e   : > { %v974_v57 = vmul.f32 %v3720_v10, %v4999_v8  ;;  %v934_v3 = vpop.f32.mrb[1].mxu0  ;;  %v3309_v10 = vrot.slane %v3293_v59, 9 }
 0x26f   : > { %v972_v11 = vmul.f32 %v4999_v8, %v934_v3  ;;  %v3721_v12 = vpop.f32.mrb[2].mxu0  ;;  %v1228_v3 = vrot.slane %v1226_v1, 5 }
 0x270   : > { %v989_v63 = vadd.f32 %v5001_v40, %v974_v57  ;;  %v975_v13 = vmul.f32 %v3721_v12, %v4999_v8  ;;  %v937_v14 = vpop.f32.mrb[3].mxu0  ;;  %v1224_v57 = vrot.slane %v1223_v0, 4 }
 0x271   : > { %v987_v17 = vadd.f32 %v5001_v40, %v972_v11  ;;  %v973_v15 = vmul.f32 %v4999_v8, %v937_v14  ;;  %v1818_v11 = vshll.u32 %v3371_v30, 16 }
 0x272   : > { %v997_v18 = vmax.f32 %v989_v63, 0.0  ;;  %v990_v20 = vadd.f32 %v5001_v40, %v975_v13  ;;  %v5027_v63 = vrot.slane %v1815_v4, 4  ;;  %v5029_v13 = vshll.u32 %v3372_v7, 16 }
 0x273   : > { %v995_v21 = vmax.f32 %v987_v17, 0.0  ;;  %v988_v22 = vadd.f32 %v5001_v40, %v973_v15 }
 0x274   : > { %v1063_v23 = vpack.c.bf16 %v997_v18, %v997_v18  ;;  %v998_v25 = vmax.f32 %v990_v20, 0.0  ;;  %v1382_v18 = vsel %vm5023_vm9, %v3309_v10, %v1381_v50  ;;  %v5039_v20 = vsel %vm4801_vm2, %v1224_v57, %v1228_v3  ;;  %v1154_v10 = vld [vmem:[#allocation2 + $0x38] sm:$0x1f] }
 0x275   : > { %v1061_v27 = vpack.c.bf16 %v995_v21, %v995_v21  ;;  %v996_v28 = vmax.f32 %v988_v22, 0.0  ;;  %v5045_v22 = vrot.slane %v1818_v11, 5 }
 0x276   : > { %v1084_v29 = vshrl.u32 %v1063_v23, 16  ;;  %v1064_v31 = vpack.c.bf16 %v998_v25, %v998_v25  ;;  %v1087_v36 = vshll.u32 %v1063_v23, 16 }
 0x277   : > { %v1070_v33 = vshrl.u32 %v1061_v27, 16  ;;  %v1062_v24 = vpack.c.bf16 %v996_v28, %v996_v28  ;;  %v1073_v43 = vshll.u32 %v1061_v27, 16 }
 0x278   : > { %v1086_v35 = vrot.slane %v1084_v29, 7  ;;  %v1091_v37 = vshrl.u32 %v1064_v31, 16  ;;  %v1094_v48 = vshll.u32 %v1064_v31, 16 }
 0x279   : > { %v1072_v42 = vrot.slane %v1070_v33, 7  ;;  %v1077_v44 = vshrl.u32 %v1062_v24, 16  ;;  %v1080_v53 = vshll.u32 %v1062_v24, 16 }
 0x27a   : > { %v1089_v9 = vor.u32 %v1087_v36, %v1086_v35  ;;  %v1093_v47 = vrot.slane %v1091_v37, 7 }
 0x27b   : > { %v1075_v49 = vor.u32 %v1073_v43, %v1072_v42  ;;  %v1079_v52 = vrot.slane %v1077_v44, 7 }
 0x27c   : > { %v1143_v55 = vsel %vm5011_vm6, %v1089_v9, %v1142_v32  ;;  %v1096_v56 = vor.u32 %v1094_v48, %v1093_v47  ;;  %v3925_v48 = vld [vmem:[#allocation8 + $0x180] sm:$0xff]  }
 0x27d   : > { %1144 = vst [vmem:[#allocation2 + $0x18] sm:$0x1f] %v1143_v55  ;;  %v1137_v61 = vsel %vm5011_vm6, %v1075_v49, %v1136_v19  ;;  %v1082_v62 = vor.u32 %v1080_v53, %v1079_v52  ;;  %v3939_v55 = vld [vmem:[#allocation8 + $0x1c8] sm:$0xff]  }
 0x27e   : > { %1138 = vst [vmem:[#allocation2 + $0x8] sm:$0x1f] %v1137_v61  ;;  %v1146_v2 = vsel %vm5011_vm6, %v1096_v56, %v1145_v51 }
 0x27f   : > { %1147 = vst [vmem:[#allocation2 + $0x20] sm:$0x1f] %v1146_v2  ;;  %v1140_v6 = vsel %vm5011_vm6, %v1082_v62, %v1139_v58 }
 0x280   : > { %1141 = vst [vmem:[#allocation2 + $0x10] sm:$0x1f] %v1140_v6 }
 0x284   : > { %v5031_v14 = vld [vmem:[#allocation2 + $0x18] sm:$0x1f]  ;;  %v3724_v17 = vpop.f32.mrb[4].mxu0 }
 0x285   : > { %v5033_v16 = vld [vmem:[#allocation2 + $0x18] sm:$0x1e]  ;;  %v1329_v15 = vld [vmem:[#allocation2 + $0x8] sm:$0x1e]  ;;  %v5043_v21 = vcombine.low %v5031_v14, %v5031_v14  ;;  %v978_v23 = vmul.f32 %v3724_v17, %v4999_v8  ;;  %v950_v25 = vpop.f32.mrb[5].mxu0  ;;  %v3284_v28 = vcombine.high %v5031_v14, %v5031_v14 }
 0x286   : > { %v3295_v26 = vcombine.low %v1329_v15, %v1329_v15  ;;  %v3296_v27 = vcombine.high %v1329_v15, %v1329_v15  ;;  %v976_v5 = vmul.f32 %v4999_v8, %v950_v25  ;;  %v3725_v29 = vpop.f32.mrb[6].mxu0  ;;  %v3299_v33 = vcombine.low %v5033_v16, %v5033_v16  ;;  %v1169_v39 = vld [vmem:[#allocation2 + $0x8] sm:$0x1f]  ;;  %v3921_v58 = vld [vmem:[#allocation2 + $0x18] ss:$8 sps:$4 sm:$0xff]  }
 0x287   : > { %v3914_v31 = vld [vmem:[#allocation2 + $0x8] ss:$8 sps:$4 sm:$0xff]   ;;  %v1259_v32 = vshrl.u32 %v5043_v21, 16  ;;  %v3300_v24 = vcombine.high %v5033_v16, %v5033_v16  ;;  %v993_v34 = vadd.f32 %v5001_v40, %v978_v23  ;;  %v979_v35 = vmul.f32 %v3725_v29, %v4999_v8  ;;  %v953_v36 = vpop.f32.mrb[7].mxu0 }
 0x288   : > { %v3310_v37 = vrot.slane %v3295_v26, 9  ;;  %v1385_v38 = vrot.slane %v3296_v27, 5  ;;  %v991_v42 = vadd.f32 %v5001_v40, %v976_v5  ;;  %v977_v43 = vmul.f32 %v4999_v8, %v953_v36  ;;  %2749 = vmatprep.mubr.bf16.mxu0 %v3914_v31  ;;  %v1170_v46 = vld [vmem:[#allocation2 + $0x10] sm:$0x1f]  ;;  %v3943_v17 = vld [vmem:[#allocation8 + $0x1d0] sm:$0xff]  }
 0x289   : > { %v3279_v44 = vcombine.low %v1169_v39, %v1169_v39  ;;  %v3280_v45 = vcombine.high %v1169_v39, %v1169_v39  ;;  %v1001_v9 = vmax.f32 %v993_v34, 0.0  ;;  %v994_v19 = vadd.f32 %v5001_v40, %v979_v35  ;;  %v1157_v5 = vld [vmem:[#allocation2 + $0x40] sm:$0x1f] }
 0x28a   : > { %v1386_v47 = vsel %vm5023_vm9, %v3310_v37, %v1385_v38  ;;  %v3281_v49 = vcombine.low %v1170_v46, %v1170_v46  ;;  %v999_v51 = vmax.f32 %v991_v42, 0.0  ;;  %v992_v52 = vadd.f32 %v5001_v40, %v977_v43  ;;  %v3940_v40 = vld [vmem:[#allocation8 + $0x188] sm:$0xff]   ;;  %v3944_v39 = vld [vmem:[#allocation8 + $0x190] sm:$0xff]  }
 0x28b   : > { %v3405_v53 = vcombine.low %v1382_v18, %v1386_v47  ;;  %v1231_v30 = vshrl.u32 %v3279_v44, 16  ;;  %v1067_v56 = vpack.c.bf16 %v1001_v9, %v1001_v9  ;;  %v1002_v8 = vmax.f32 %v994_v19, 0.0  ;;  %v1148_v18 = vld [vmem:[#allocation2 + $0x28] sm:$0x1f]  ;;  %v1151_v47 = vld [vmem:[#allocation2 + $0x30] sm:$0x1f] }
 0x28c   : > { %v1234_v59 = vshll.u32 %v3279_v44, 16  ;;  %v1240_v60 = vshll.u32 %v3280_v45, 16  ;;  %v1065_v61 = vpack.c.bf16 %v999_v51, %v999_v51  ;;  %v1000_v62 = vmax.f32 %v992_v52, 0.0  ;;  %v1330_v52 = vld [vmem:[#allocation2 + $0x10] sm:$0x1e] }
 0x28d   : > { %2750 = vmatmul.mubr.bf16.vlgmr.msra.gmra.mrb[8].mxu0 %v3405_v53  ;;  %v1233_v0 = vrot.slane %v1231_v30, 4  ;;  %v3282_v1 = vcombine.high %v1170_v46, %v1170_v46  ;;  %v1112_v2 = vshrl.u32 %v1067_v56, 16  ;;  %v1115_v6 = vshll.u32 %v1067_v56, 16  ;;  %v3948_v46 = vld [vmem:[#allocation8 + $0x1d8] sm:$0xff]   ;;  %v3942_v56 = vld [vmem:[#allocation8 + $0x100] sm:$0xff]  }
 0x28e   : > { %v1068_v7 = vpack.c.bf16 %v1002_v8, %v1002_v8  ;;  %2757 = vmatprep.mubr.bf16.mxu0 %v3921_v58  ;;  %3661 = vmatpush3.bf16.msra.mxu0 %v3925_v48  ;;  %v1236_v4 = vrot.slane %v1234_v59, 5  ;;  %v1098_v50 = vshrl.u32 %v1065_v61, 16  ;;  %v1101_v57 = vshll.u32 %v1065_v61, 16  ;;  %v3945_v8 = vld [vmem:[#allocation8 + $0x148] sm:$0xff]   ;;  %v3950_v58 = vld [vmem:[#allocation8 + $0x198] sm:$0xff]  }
 0x28f   : > { %v1066_v3 = vpack.c.bf16 %v1000_v62, %v1000_v62  ;;  %v1242_v11 = vrot.slane %v1240_v60, 5  ;;  %3662 = vmatprep.subr.bf16.mxu0 %v3939_v55  ;;  %v1114_v15 = vrot.slane %v1112_v2, 7  ;;  %v1245_v34 = vshrl.u32 %v3281_v49, 16  ;;  %v3930_v60 = vld [vmem:[#allocation2] ss:$8 sps:$4 sm:$0xff]  }
 0x290   : > { %v1119_v23 = vshrl.u32 %v1068_v7, 16  ;;  %v1122_v25 = vshll.u32 %v1068_v7, 16  ;;  %v1237_v26 = vor.u32 %v1236_v4, %v1233_v0  ;;  %v1100_v27 = vrot.slane %v1098_v50, 7  ;;  %v3957_v4 = vld [vmem:[#allocation8 + $0x1e0] sm:$0xff]  }
 0x291   : > { %v1105_v29 = vshrl.u32 %v1066_v3, 16  ;;  %v1108_v31 = vshll.u32 %v1066_v3, 16  ;;  %v1117_v35 = vor.u32 %v1115_v6, %v1114_v15  ;;  %v1248_v38 = vshll.u32 %v3281_v49, 16  ;;  %v5087_v3 = vld [vmem:[#allocation2 + $0x10] sm:$0x1f] }
 0x292   : > { %v1121_v36 = vrot.slane %v1119_v23, 7  ;;  %v1238_v37 = vrot.slane %v1237_v26, 4  ;;  %3663 = vmatpush3.bf16.msra.mxu0 %v3940_v40  ;;  %v1103_v42 = vor.u32 %v1101_v57, %v1100_v27  ;;  %v1247_v44 = vrot.slane %v1245_v34, 4  ;;  %v3959_v26 = vld [vmem:[#allocation8 + $0x1a0] sm:$0xff]  }
 0x293   : > { %v1107_v43 = vrot.slane %v1105_v29, 7  ;;  %v1254_v45 = vshll.u32 %v3282_v1, 16  ;;  %3664 = vmatprep.subr.bf16.mxu0 %v3943_v17  ;;  %v1155_v9 = vsel %vm5011_vm6, %v1117_v35, %v1154_v10  ;;  %v1250_v51 = vrot.slane %v1248_v38, 5  ;;  %v1332_v1 = vld [vmem:[#allocation2 + $0x20] sm:$0x1e] }
 0x294   : > { %v1124_v19 = vor.u32 %v1122_v25, %v1121_v36  ;;  %v1243_v48 = vsel %vm4801_vm2, %v1238_v37, %v1242_v11  ;;  %1156 = vst [vmem:[#allocation2 + $0x38] sm:$0x1f] %v1155_v9  ;;  %v1149_v49 = vsel %vm5011_vm6, %v1103_v42, %v1148_v18  ;;  %v1261_v62 = vrot.slane %v1259_v32, 4  ;;  %v1172_v10 = vld [vmem:[#allocation2 + $0x20] sm:$0x1f] }
 0x295   : > { %v1110_v53 = vor.u32 %v1108_v31, %v1107_v43  ;;  %v3401_v30 = vcombine.low %v5039_v20, %v1243_v48  ;;  %v1256_v55 = vrot.slane %v1254_v45, 5  ;;  %1150 = vst [vmem:[#allocation2 + $0x28] sm:$0x1f] %v1149_v49  ;;  %v1251_v61 = vor.u32 %v1250_v51, %v1247_v44  ;;  %v3962_v31 = vld [vmem:[#allocation8 + $0x1e8] sm:$0xff]   ;;  %v3952_v37 = vld [vmem:[#allocation8 + $0x110] sm:$0xff]  }
 0x296   : > { %v1158_v59 = vsel %vm5011_vm6, %v1124_v19, %v1157_v5  ;;  %v1262_v0 = vshll.u32 %v5043_v21, 16  ;;  %3665 = vmatpush3.bf16.msra.mxu0 %v3944_v39  ;;  %v1268_v2 = vshll.u32 %v3284_v28, 16  ;;  %v3297_v6 = vcombine.low %v1330_v52, %v1330_v52  ;;  %v3947_v28 = vld [vmem:[#allocation8 + $0x108] sm:$0xff]   ;;  %v3979_v51 = vld [vmem:[#allocation8 + $0x1f0] sm:$0xff]  }
 0x297   : > { %1159 = vst [vmem:[#allocation2 + $0x40] sm:$0x1f] %v1158_v59  ;;  %v1152_v20 = vsel %vm5011_vm6, %v1110_v53, %v1151_v47  ;;  %2684 = vmatprep.mubr.bf16.mxu1 %v3401_v30  ;;  %v3298_v7 = vcombine.high %v1330_v52, %v1330_v52  ;;  %3666 = vmatprep.subr.bf16.mxu0 %v3948_v46  ;;  %v1252_v32 = vrot.slane %v1251_v61, 4  ;;  %v3312_v21 = vrot.slane %v3299_v33, 9  ;;  %v3963_v42 = vld [vmem:[#allocation8 + $0x1a8] sm:$0xff]   ;;  %v3960_v47 = vld [vmem:[#allocation8 + $0x158] sm:$0xff]  }
 0x298   : > { %1153 = vst [vmem:[#allocation2 + $0x30] sm:$0x1f] %v1152_v20  ;;  %2685 = vmatmul.mubr.bf16.vlgmr.msra.gmra.mrb[0].mxu1 %v3930_v60  ;;  %v1264_v40 = vrot.slane %v1262_v0, 5  ;;  %v1393_v41 = vrot.slane %v3300_v24, 5  ;;  %v3311_v50 = vrot.slane %v3297_v6, 9  ;;  %v3301_v57 = vcombine.low %v1332_v1, %v1332_v1  ;;  %v3951_v24 = vld [vmem:[#allocation8 + $0x150] sm:$0xff]  }
 0x299   : > { %v1389_v14 = vrot.slane %v3298_v7, 5  ;;  %3621 = vmatpush3.bf16.msra.mxu1 %v3942_v56  ;;  %v1821_v11 = vor.u32 %v5045_v22, %v5027_v63  ;;  %v1257_v17 = vsel %vm4801_vm2, %v1252_v32, %v1256_v55  ;;  %v1270_v33 = vrot.slane %v1268_v2, 5  ;;  %v3961_v7 = vld [vmem:[#allocation8 + $0x118] sm:$0xff]  }
 0x29a   : > { %v1265_v15 = vor.u32 %v1264_v40, %v1261_v62  ;;  %v1394_v16 = vsel %vm5023_vm9, %v3312_v21, %v1393_v41  ;;  %3622 = vmatprep.subr.bf16.mxu1 %v3945_v8  ;;  %3667 = vmatpush3.bf16.msra.mxu0 %v3950_v58  ;;  %v3302_v23 = vcombine.high %v1332_v1, %v1332_v1  ;;  %v3313_v25 = vrot.slane %v3301_v57, 9  ;;  %v3946_v8 = vld [vmem:[#allocation2 + $0x10] ss:$8 sps:$4 sm:$0xff]  }
 0x29b   : > { %v1390_v18 = vsel %vm5023_vm9, %v3311_v50, %v1389_v14  ;;  %3668 = vmatprep.subr.bf16.mxu0 %v3957_v4  ;;  %v3285_v27 = vcombine.low %v1172_v10, %v1172_v10  ;;  %v3286_v34 = vcombine.high %v1172_v10, %v1172_v10  ;;  %v5097_v35 = vld [vmem:[#allocation2 + $0x38] sm:$0x1f]  ;;  %v5101_v36 = vcombine.low %v5087_v3, %v5087_v3 }
 0x29c   : > { %v1266_v5 = vrot.slane %v1265_v15, 4  ;;  %v3406_v29 = vcombine.low %v1390_v18, %v1394_v16  ;;  %v1333_v38 = vld [vmem:[#allocation2 + $0x28] sm:$0x1e]  ;;  %v1397_v39 = vrot.slane %v3302_v23, 5  ;;  %v5105_v44 = vcombine.low %v5097_v35, %v5097_v35  ;;  %v3970_v18 = vld [vmem:[#allocation8 + $0x120] sm:$0xff]  }
 0x29d   : > { %3623 = vmatpush3.bf16.msra.mxu1 %v3947_v28  ;;  %v1273_v43 = vshrl.u32 %v3285_v27, 16  ;;  %v3292_v45 = vcombine.high %v5097_v35, %v5097_v35  ;;  %v3303_v9 = vcombine.low %v1333_v38, %v1333_v38  ;;  %v3304_v19 = vcombine.high %v1333_v38, %v1333_v38  ;;  %v1173_v48 = vld [vmem:[#allocation2 + $0x28] sm:$0x1f]  ;;  %v3968_v28 = vld [vmem:[#allocation8 + $0x160] sm:$0xff]  }
 0x29e   : > { %v1271_v46 = vsel %vm4801_vm2, %v1266_v5, %v1270_v33  ;;  %2758 = vmatmul.mubr.bf16.gmra.mrb[12].mxu0 %v3406_v29  ;;  %3624 = vmatprep.subr.bf16.mxu1 %v3951_v24  ;;  %v1826_v52 = vrot.slane %v5029_v13, 5  ;;  %v1398_v30 = vsel %vm5023_vm9, %v3313_v25, %v1397_v39  ;;  %v3287_v55 = vcombine.low %v1173_v48, %v1173_v48  ;;  %v3958_v41 = vld [vmem:[#allocation2 + $0x38] ss:$8 sps:$4 sm:$0xff]   ;;  %v3980_v16 = vld [vmem:[#allocation8 + $0x1b0] sm:$0xff]   ;;  %v3987_v5 = vld [vmem:[#allocation8 + $0x1f8] sm:$0xff]  }
 0x29f   : > { %v3402_v49 = vcombine.low %v1257_v17, %v1271_v46  ;;  %v3949_v53 = vld [vmem:[#allocation2 + $0x28] ss:$8 sps:$4 sm:$0xff]   ;;  %3669 = vmatpush3.bf16.msra.mxu0 %v3959_v26  ;;  %v3288_v56 = vcombine.high %v1173_v48, %v1173_v48  ;;  %v3314_v58 = vrot.slane %v3303_v9, 9  ;;  %v1401_v59 = vrot.slane %v3304_v19, 5 }
 0x2a0   : > { %3670 = vmatprep.subr.bf16.mxu0 %v3962_v31  ;;  %v1275_v60 = vrot.slane %v1273_v43, 4  ;;  %v1276_v61 = vshll.u32 %v3285_v27, 16  ;;  %2765 = vmatprep.mubr.bf16.mxu0 %v3949_v53  ;;  %v1282_v62 = vshll.u32 %v3286_v34, 16  ;;  %v1287_v0 = vshrl.u32 %v3287_v55, 16  ;;  %v1174_v2 = vld [vmem:[#allocation2 + $0x30] sm:$0x1f] }
 0x2a1   : > { %2692 = vmatprep.mubr.bf16.mxu1 %v3402_v49  ;;  %v1290_v1 = vshll.u32 %v3287_v55, 16  ;;  %v1296_v20 = vshll.u32 %v3288_v56, 16  ;;  %v1402_v6 = vsel %vm5023_vm9, %v3314_v58, %v1401_v59  ;;  %v3289_v32 = vcombine.low %v1174_v2, %v1174_v2  ;;  %3625 = vmatpush3.bf16.msra.mxu1 %v3952_v37  ;;  %v1334_v27 = vld [vmem:[#allocation2 + $0x30] sm:$0x1e]  ;;  %v1335_v37 = vld [vmem:[#allocation2 + $0x38] sm:$0x1e] }
 0x2a2   : > { %2693 = vmatmul.mubr.bf16.gmra.mrb[4].mxu1 %v3946_v8  ;;  %v1278_v4 = vrot.slane %v1276_v61, 5  ;;  %v3290_v40 = vcombine.high %v1174_v2, %v1174_v2  ;;  %v3407_v21 = vcombine.low %v1398_v30, %v1402_v6  ;;  %v1284_v10 = vrot.slane %v1282_v62, 5  ;;  %3626 = vmatprep.subr.bf16.mxu1 %v3960_v47  ;;  %v3985_v47 = vld [vmem:[#allocation8 + $0x168] sm:$0xff]   ;;  %v3988_v30 = vld [vmem:[#allocation8 + $0x1b8] sm:$0xff]  }
 0x2a3   : > { %3671 = vmatpush3.bf16.msra.mxu0 %v3963_v42  ;;  %v1289_v50 = vrot.slane %v1287_v0, 4  ;;  %v1292_v14 = vrot.slane %v1290_v1, 5  ;;  %v1298_v17 = vrot.slane %v1296_v20, 5  ;;  %v1301_v15 = vshrl.u32 %v3289_v32, 16  ;;  %v1669_v53 = vld [vmem:[#allocation2 + $0x18] sm:$0x1f] }
 0x2a4   : > { %v1279_v57 = vor.u32 %v1278_v4, %v1275_v60  ;;  %v1304_v33 = vshll.u32 %v3289_v32, 16  ;;  %3672 = vmatprep.subr.bf16.mxu0 %v3979_v51  ;;  %v1310_v23 = vshll.u32 %v3290_v40, 16  ;;  %v1315_v25 = vshrl.u32 %v5105_v44, 16  ;;  %v3969_v59 = vld [vmem:[#allocation2 + $0x20] ss:$8 sps:$4 sm:$0xff]  }
 0x2a5   : > { %v1293_v24 = vor.u32 %v1292_v14, %v1289_v50  ;;  %v1318_v26 = vshll.u32 %v5105_v44, 16  ;;  %v1303_v31 = vrot.slane %v1301_v15, 4  ;;  %v1324_v35 = vshll.u32 %v3292_v45, 16  ;;  %3627 = vmatpush3.bf16.msra.mxu1 %v3961_v7  ;;  %v3986_v1 = vld [vmem:[#allocation8 + $0x128] sm:$0xff]   ;;  %v3989_v4 = vld [vmem:[#allocation8 + $0x170] sm:$0xff]  }
 0x2a6   : > { %2766 = vmatmul.mubr.bf16.gmra.mrb[16].mxu0 %v3407_v21  ;;  %v1280_v29 = vrot.slane %v1279_v57, 4  ;;  %v1306_v34 = vrot.slane %v1304_v33, 5  ;;  %v1312_v39 = vrot.slane %v1310_v23, 5  ;;  %v1317_v42 = vrot.slane %v1315_v25, 4  ;;  %3628 = vmatprep.subr.bf16.mxu1 %v3968_v28  ;;  %v1580_v57 = vld [vmem:[#allocation2 + $0x10] sm:$0x1e] }
 0x2a7   : > { %2773 = vmatprep.mubr.bf16.mxu0 %v3958_v41  ;;  %v1294_v38 = vrot.slane %v1293_v24, 4  ;;  %v1320_v43 = vrot.slane %v1318_v26, 5  ;;  %v1326_v44 = vrot.slane %v1324_v35, 5  ;;  %v3305_v19 = vcombine.low %v1334_v27, %v1334_v27  ;;  %3673 = vmatpush3.bf16.msra.mxu0 %v3980_v16  ;;  %v1579_v41 = vld [vmem:[#allocation2 + $0x8] sm:$0x1e] }
 0x2a8   : > { %v1285_v46 = vsel %vm4801_vm2, %v1280_v29, %v1284_v10  ;;  %v1307_v9 = vor.u32 %v1306_v34, %v1303_v31  ;;  %v3306_v51 = vcombine.high %v1334_v27, %v1334_v27  ;;  %v3307_v49 = vcombine.low %v1335_v37, %v1335_v37  ;;  %3674 = vmatprep.subr.bf16.mxu0 %v3987_v5  ;;  %v3991_v24 = vld [vmem:[#allocation8 + $0x130] sm:$0xff]   ;;  %v4001_v27 = vld [vmem:[#allocation8 + $0x178] sm:$0xff]  }
 0x2a9   : > { %v1299_v48 = vsel %vm4801_vm2, %v1294_v38, %v1298_v17  ;;  %v1321_v45 = vor.u32 %v1320_v43, %v1317_v42  ;;  %v3308_v8 = vcombine.high %v1335_v37, %v1335_v37  ;;  %v3315_v58 = vrot.slane %v3305_v19, 9  ;;  %3629 = vmatpush3.bf16.msra.mxu1 %v3970_v18  ;;  %v1670_v18 = vld [vmem:[#allocation2 + $0x20] sm:$0x1f]  ;;  %v1671_v35 = vld [vmem:[#allocation2 + $0x28] sm:$0x1f] }
 0x2aa   : > { %v3403_v55 = vcombine.low %v1285_v46, %v1299_v48  ;;  %v1308_v56 = vrot.slane %v1307_v9, 4  ;;  %v1405_v61 = vrot.slane %v3306_v51, 5  ;;  %v3316_v62 = vrot.slane %v3307_v49, 9  ;;  %3630 = vmatprep.subr.bf16.mxu1 %v3985_v47  ;;  %v3990_v9 = vld [vmem:[#allocation2 + $0x30] ss:$8 sps:$4 sm:$0xff]  }
 0x2ab   : > { %v1322_v60 = vrot.slane %v1321_v45, 4  ;;  %v3358_v0 = vcombine.high %v5087_v3, %v5087_v3  ;;  %v1409_v2 = vrot.slane %v3308_v8, 5  ;;  %v3359_v6 = vcombine.low %v1669_v53, %v1669_v53  ;;  %3675 = vmatpush3.bf16.msra.mxu0 %v3988_v30  ;;  %v4002_v47 = vld [vmem:[#allocation8 + $0x138] sm:$0xff]  }
 0x2ac   : > { %2700 = vmatprep.mubr.bf16.mxu1 %v3403_v55  ;;  %v1313_v20 = vsel %vm4801_vm2, %v1308_v56, %v1312_v39  ;;  %v3360_v7 = vcombine.high %v1669_v53, %v1669_v53  ;;  %v1406_v40 = vsel %vm5023_vm9, %v3315_v58, %v1405_v61  ;;  %v1717_v21 = vshrl.u32 %v5101_v36, 16  ;;  %v5134_v53 = vld [vmem:[#allocation8 + $0x200] sm:$0xff]  }
 0x2ad   : > { %2701 = vmatmul.mubr.bf16.gmra.mrb[8].mxu1 %v3969_v59  ;;  %v1327_v32 = vsel %vm4801_vm2, %v1322_v60, %v1326_v44  ;;  %v1720_v3 = vshll.u32 %v5101_v36, 16  ;;  %v1410_v50 = vsel %vm5023_vm9, %v3316_v62, %v1409_v2  ;;  %v1726_v14 = vshll.u32 %v3358_v0, 16  ;;  %v1419_v62 = vld [vmem:[#allocation2 + $0x8] sm:$0x1f] }
 0x2ae   : > { %v3404_v10 = vcombine.low %v1313_v20, %v1327_v32  ;;  %v1731_v28 = vshrl.u32 %v3359_v6, 16  ;;  %v3408_v17 = vcombine.low %v1406_v40, %v1410_v50  ;;  %v1719_v15 = vrot.slane %v1717_v21, 4  ;;  %3631 = vmatpush3.bf16.msra.mxu1 %v3986_v1 }
 0x2af   : > { %v1722_v33 = vrot.slane %v1720_v3, 5  ;;  %v1734_v16 = vshll.u32 %v3359_v6, 16  ;;  %v1728_v23 = vrot.slane %v1726_v14, 5  ;;  %v1740_v36 = vshll.u32 %v3360_v7, 16  ;;  %3632 = vmatprep.subr.bf16.mxu1 %v3989_v4  ;;  %v1420_v6 = vld [vmem:[#allocation2 + $0x10] sm:$0x1f] }
 0x2b0   : > { %2708 = vmatprep.mubr.bf16.mxu1 %v3404_v10  ;;  %v1733_v25 = vrot.slane %v1731_v28, 4  ;;  %v3333_v26 = vcombine.low %v1579_v41, %v1579_v41  ;;  %2774 = vmatmul.mubr.bf16.gmra.mrb[20].mxu0 %v3408_v17  ;;  %v3334_v31 = vcombine.high %v1579_v41, %v1579_v41  ;;  %v3335_v34 = vcombine.low %v1580_v57, %v1580_v57  ;;  %v1581_v7 = vld [vmem:[#allocation2 + $0x18] sm:$0x1e] }
 0x2b1   : > { %v1723_v5 = vor.u32 %v1722_v33, %v1719_v15  ;;  %v1736_v29 = vrot.slane %v1734_v16, 5  ;;  %v1742_v37 = vrot.slane %v1740_v36, 5  ;;  %v3336_v38 = vcombine.high %v1580_v57, %v1580_v57  ;;  %v3996_v3 = vld [vmem:[#allocation2 + $0x10] ss:$8 sps:$4 sm:$0xff]  }
 0x2b2   : > { %v3349_v39 = vrot.slane %v3333_v26, 9  ;;  %v3361_v42 = vcombine.low %v1670_v18, %v1670_v18  ;;  %3633 = vmatpush3.bf16.msra.mxu1 %v3991_v24  ;;  %v1629_v44 = vrot.slane %v3334_v31, 5  ;;  %v3350_v19 = vrot.slane %v3335_v34, 9  ;;  %v1582_v34 = vld [vmem:[#allocation2 + $0x20] sm:$0x1e] }
 0x2b3   : > { %v1724_v43 = vrot.slane %v1723_v5, 4  ;;  %v1737_v46 = vor.u32 %v1736_v29, %v1733_v25  ;;  %v1633_v48 = vrot.slane %v3336_v38, 5  ;;  %v3362_v45 = vcombine.high %v1670_v18, %v1670_v18  ;;  %3634 = vmatprep.subr.bf16.mxu1 %v4001_v27 }
 0x2b4   : > { %v3363_v51 = vcombine.low %v1671_v35, %v1671_v35  ;;  %v3364_v49 = vcombine.high %v1671_v35, %v1671_v35  ;;  %v1630_v56 = vsel %vm5023_vm9, %v3349_v39, %v1629_v44  ;;  %v1745_v8 = vshrl.u32 %v3361_v42, 16 }
 0x2b5   : > { %v1729_v30 = vsel %vm4801_vm2, %v1724_v43, %v1728_v23  ;;  %v1738_v55 = vrot.slane %v1737_v46, 4  ;;  %2709 = vmatmul.mubr.bf16.gmra.mrb[12].mxu1 %v3990_v9  ;;  %v1634_v58 = vsel %vm5023_vm9, %v3350_v19, %v1633_v48  ;;  %v1748_v59 = vshll.u32 %v3361_v42, 16  ;;  %v1672_v42 = vld [vmem:[#allocation2 + $0x30] sm:$0x1f] }
 0x2b6   : > { %v1754_v60 = vshll.u32 %v3362_v45, 16  ;;  %v1759_v61 = vshrl.u32 %v3363_v51, 16  ;;  %v3417_v1 = vcombine.low %v1630_v56, %v1634_v58  ;;  %v1747_v20 = vrot.slane %v1745_v8, 4  ;;  %3635 = vmatpush3.bf16.msra.mxu1 %v4002_v47  ;;  %v4012_v56 = vld [vmem:[#allocation2 + $0x20] ss:$8 sps:$4 sm:$0xff]  }
 0x2b7   : > { %v1743_v0 = vsel %vm4801_vm2, %v1738_v55, %v1742_v37  ;;  %v1762_v2 = vshll.u32 %v3363_v51, 16  ;;  %v1750_v32 = vrot.slane %v1748_v59, 5  ;;  %3726 = vmatprep.subr.bf16.mxu1 %v5134_v53  ;;  %v1768_v10 = vshll.u32 %v3364_v49, 16  ;;  %v1673_v51 = vld [vmem:[#allocation2 + $0x38] sm:$0x1f] }
 0x2b8   : > { %v3425_v4 = vcombine.low %v1729_v30, %v1743_v0  ;;  %v1756_v40 = vrot.slane %v1754_v60, 5  ;;  %v1761_v21 = vrot.slane %v1759_v61, 4  ;;  %2814 = vmatprep.mubr.bf16.mxu1 %v3417_v1  ;;  %v3317_v50 = vcombine.low %v1419_v62, %v1419_v62 }
 0x2b9   : > { %v1764_v41 = vrot.slane %v1762_v2, 5  ;;  %v3318_v14 = vcombine.high %v1419_v62, %v1419_v62  ;;  %v1751_v28 = vor.u32 %v1750_v32, %v1747_v20  ;;  %v3319_v57 = vcombine.low %v1420_v6, %v1420_v6  ;;  %v1421_v32 = vld [vmem:[#allocation2 + $0x18] sm:$0x1f] }
 0x2ba   : > { %2879 = vmatprep.mubr.bf16.mxu0 %v3425_v4  ;;  %v3320_v17 = vcombine.high %v1420_v6, %v1420_v6  ;;  %v3337_v15 = vcombine.low %v1581_v7, %v1581_v7  ;;  %v1770_v16 = vrot.slane %v1768_v10, 5  ;;  %v1468_v24 = vshrl.u32 %v3317_v50, 16  ;;  %v4017_v10 = vld [vmem:[#allocation8 + $0x208] sm:$0xff]  }
 0x2bb   : > { %2880 = vmatmul.mubr.bf16.vlgmr.msra.gmra.mrb[24].mxu0 %v3996_v3  ;;  %v1765_v33 = vor.u32 %v1764_v41, %v1761_v21  ;;  %v1471_v18 = vshll.u32 %v3317_v50, 16  ;;  %v1752_v23 = vrot.slane %v1751_v28, 4  ;;  %v1477_v25 = vshll.u32 %v3318_v14, 16  ;;  %v1422_v50 = vld [vmem:[#allocation2 + $0x20] sm:$0x1f] }
 0x2bc   : > { %v1482_v36 = vshrl.u32 %v3319_v57, 16  ;;  %v1485_v26 = vshll.u32 %v3319_v57, 16  ;;  %v1470_v5 = vrot.slane %v1468_v24, 4  ;;  %v1491_v31 = vshll.u32 %v3320_v17, 16 }
 0x2bd   : > { %v1766_v27 = vrot.slane %v1765_v33, 4  ;;  %v1473_v29 = vrot.slane %v1471_v18, 5  ;;  %v1757_v35 = vsel %vm4801_vm2, %v1752_v23, %v1756_v40  ;;  %v1479_v37 = vrot.slane %v1477_v25, 5 }
 0x2be   : > { %v1484_v38 = vrot.slane %v1482_v36, 4  ;;  %v1487_v39 = vrot.slane %v1485_v26, 5  ;;  %v1493_v9 = vrot.slane %v1491_v31, 5  ;;  %v3338_v44 = vcombine.high %v1581_v7, %v1581_v7  ;;  %v4018_v26 = vld [vmem:[#allocation8 + $0x210] sm:$0xff]  }
 0x2bf   : > { %v1771_v43 = vsel %vm4801_vm2, %v1766_v27, %v1770_v16  ;;  %v1474_v46 = vor.u32 %v1473_v29, %v1470_v5  ;;  %v3339_v48 = vcombine.low %v1582_v34, %v1582_v34  ;;  %v3340_v45 = vcombine.high %v1582_v34, %v1582_v34 }
 0x2c0   : > { %v3426_v19 = vcombine.low %v1757_v35, %v1771_v43  ;;  %v1488_v47 = vor.u32 %v1487_v39, %v1484_v38  ;;  %v3351_v30 = vrot.slane %v3337_v15, 9  ;;  %v1637_v55 = vrot.slane %v3338_v44, 5  ;;  %v1583_v39 = vld [vmem:[#allocation2 + $0x28] sm:$0x1e] }
 0x2c1   : > { %v1475_v49 = vrot.slane %v1474_v46, 4  ;;  %v3365_v8 = vcombine.low %v1672_v42, %v1672_v42  ;;  %v3352_v59 = vrot.slane %v3339_v48, 9  ;;  %v1641_v60 = vrot.slane %v3340_v45, 5 }
 0x2c2   : > { %2887 = vmatprep.mubr.bf16.mxu0 %v3426_v19  ;;  %v1489_v58 = vrot.slane %v1488_v47, 4  ;;  %v3366_v61 = vcombine.high %v1672_v42, %v1672_v42  ;;  %v1638_v0 = vsel %vm5023_vm9, %v3351_v30, %v1637_v55  ;;  %v3367_v1 = vcombine.low %v1673_v51, %v1673_v51  ;;  %v1674_v55 = vld [vmem:[#allocation2 + $0x40] sm:$0x1f] }
 0x2c3   : > { %v1480_v62 = vsel %vm4801_vm2, %v1475_v49, %v1479_v37  ;;  %2888 = vmatmul.mubr.bf16.gmra.mrb[28].mxu0 %v4012_v56  ;;  %v3368_v20 = vcombine.high %v1673_v51, %v1673_v51  ;;  %v1642_v6 = vsel %vm5023_vm9, %v3352_v59, %v1641_v60  ;;  %v1773_v7 = vshrl.u32 %v3365_v8, 16  ;;  %v4032_v56 = vld [vmem:[#allocation8 + $0x218] sm:$0xff]  }
 0x2c4   : > { %v1494_v2 = vsel %vm4801_vm2, %v1489_v58, %v1493_v9  ;;  %v1776_v4 = vshll.u32 %v3365_v8, 16  ;;  %v3418_v21 = vcombine.low %v1638_v0, %v1642_v6  ;;  %v1782_v3 = vshll.u32 %v3366_v61, 16  ;;  %v1584_v9 = vld [vmem:[#allocation2 + $0x30] sm:$0x1e] }
 0x2c5   : > { %v3413_v40 = vcombine.low %v1480_v62, %v1494_v2  ;;  %v1787_v41 = vshrl.u32 %v3367_v1, 16  ;;  %v1775_v14 = vrot.slane %v1773_v7, 4  ;;  %v1790_v57 = vshll.u32 %v3367_v1, 16 }
 0x2c6   : > { %v1778_v28 = vrot.slane %v1776_v4, 5  ;;  %v1796_v17 = vshll.u32 %v3368_v20, 16  ;;  %v1784_v15 = vrot.slane %v1782_v3, 5  ;;  %v3321_v16 = vcombine.low %v1421_v32, %v1421_v32  ;;  %v4027_v20 = vld [vmem:[#allocation2 + $0x30] ss:$8 sps:$4 sm:$0xff]  }
 0x2c7   : > { %2815 = vmatmul.mubr.bf16.vlgmr.msra.gmra.mrb[16].mxu1 %v3413_v40  ;;  %v1789_v33 = vrot.slane %v1787_v41, 4  ;;  %v3322_v24 = vcombine.high %v1421_v32, %v1421_v32  ;;  %v1792_v23 = vrot.slane %v1790_v57, 5  ;;  %v3323_v36 = vcombine.low %v1422_v50, %v1422_v50  ;;  %v1423_v32 = vld [vmem:[#allocation2 + $0x28] sm:$0x1f] }
 0x2c8   : > { %3727 = vmatpush3.bf16.msra.mxu1 %v5134_v53  ;;  %2822 = vmatprep.mubr.bf16.mxu1 %v3418_v21  ;;  %v1779_v18 = vor.u32 %v1778_v28, %v1775_v14  ;;  %v1798_v25 = vrot.slane %v1796_v17, 5  ;;  %v3324_v27 = vcombine.high %v1422_v50, %v1422_v50  ;;  %v1496_v5 = vshrl.u32 %v3321_v16, 16  ;;  %v1424_v50 = vld [vmem:[#allocation2 + $0x30] sm:$0x1f] }
 0x2c9   : > { %3728 = vmatprep.subr.bf16.mxu1 %v4017_v10  ;;  %v1499_v29 = vshll.u32 %v3321_v16, 16  ;;  %v1505_v31 = vshll.u32 %v3322_v24, 16  ;;  %v1793_v35 = vor.u32 %v1792_v23, %v1789_v33  ;;  %v1510_v37 = vshrl.u32 %v3323_v36, 16 }
 0x2ca   : > { %v1780_v34 = vrot.slane %v1779_v18, 4  ;;  %v1513_v38 = vshll.u32 %v3323_v36, 16  ;;  %v1498_v42 = vrot.slane %v1496_v5, 4  ;;  %v1519_v53 = vshll.u32 %v3324_v27, 16  ;;  %v4043_v5 = vld [vmem:[#allocation8 + $0x228] sm:$0xff]  }
 0x2cb   : > { %v1501_v43 = vrot.slane %v1499_v29, 5  ;;  %v1507_v46 = vrot.slane %v1505_v31, 5  ;;  %v1794_v19 = vrot.slane %v1793_v35, 4  ;;  %v1512_v47 = vrot.slane %v1510_v37, 4  ;;  %v1586_v37 = vld [vmem:[#allocation2 + $0x40] sm:$0x1e] }
 0x2cc   : > { %v1785_v44 = vsel %vm4801_vm2, %v1780_v34, %v1784_v15  ;;  %3729 = vmatpush3.bf16.msra.mxu1 %v4017_v10  ;;  %v1515_v48 = vrot.slane %v1513_v38, 5  ;;  %v1521_v51 = vrot.slane %v1519_v53, 5  ;;  %v3341_v49 = vcombine.low %v1583_v39, %v1583_v39  ;;  %v4033_v10 = vld [vmem:[#allocation8 + $0x220] sm:$0xff]  }
 0x2cd   : > { %3730 = vmatprep.subr.bf16.mxu1 %v4018_v26  ;;  %v1502_v45 = vor.u32 %v1501_v43, %v1498_v42  ;;  %v3342_v30 = vcombine.high %v1583_v39, %v1583_v39  ;;  %v1799_v8 = vsel %vm4801_vm2, %v1794_v19, %v1798_v25  ;;  %v3343_v59 = vcombine.low %v1584_v9, %v1584_v9 }
 0x2ce   : > { %v1516_v58 = vor.u32 %v1515_v48, %v1512_v47  ;;  %v3344_v60 = vcombine.high %v1584_v9, %v1584_v9  ;;  %v3427_v61 = vcombine.low %v1785_v44, %v1799_v8  ;;  %v3353_v0 = vrot.slane %v3341_v49, 9  ;;  %v4044_v48 = vld [vmem:[#allocation8 + $0x230] sm:$0xff]  }
 0x2cf   : > { %v1503_v62 = vrot.slane %v1502_v45, 4  ;;  %v1645_v1 = vrot.slane %v3342_v30, 5  ;;  %v3354_v6 = vrot.slane %v3343_v59, 9  ;;  %v3369_v4 = vcombine.low %v1674_v55, %v1674_v55  ;;  %v1425_v45 = vld [vmem:[#allocation2 + $0x38] sm:$0x1f] }
 0x2d0   : > { %v1517_v2 = vrot.slane %v1516_v58, 4  ;;  %3731 = vmatpush3.bf16.msra.mxu1 %v4018_v26  ;;  %v1649_v7 = vrot.slane %v3344_v60, 5  ;;  %2895 = vmatprep.mubr.bf16.mxu0 %v3427_v61  ;;  %v3370_v3 = vcombine.high %v1674_v55, %v1674_v55  ;;  %v1822_v41 = vrot.slane %v1821_v11, 4  ;;  %v1585_v11 = vld [vmem:[#allocation2 + $0x38] sm:$0x1e] }
 0x2d1   : > { %v1508_v40 = vsel %vm4801_vm2, %v1503_v62, %v1507_v46  ;;  %v1646_v21 = vsel %vm5023_vm9, %v3353_v0, %v1645_v1  ;;  %3732 = vmatprep.subr.bf16.mxu1 %v4032_v56  ;;  %2896 = vmatmul.mubr.bf16.gmra.mrb[32].mxu0 %v4027_v20  ;;  %v1801_v57 = vshrl.u32 %v3369_v4, 16  ;;  %v1804_v17 = vshll.u32 %v3369_v4, 16  ;;  %v4042_v1 = vld [vmem:[#allocation2 + $0x40] ss:$8 sps:$4 sm:$0xff]   ;;  %v4053_v4 = vld [vmem:[#allocation8 + $0x238] sm:$0xff]  }
 0x2d2   : > { %v1522_v14 = vsel %vm4801_vm2, %v1517_v2, %v1521_v51  ;;  %v1650_v28 = vsel %vm5023_vm9, %v3354_v6, %v1649_v7  ;;  %v1810_v16 = vshll.u32 %v3370_v3, 16  ;;  %v3325_v24 = vcombine.low %v1423_v32, %v1423_v32 }
 0x2d3   : > { %v3414_v15 = vcombine.low %v1508_v40, %v1522_v14  ;;  %v3419_v33 = vcombine.low %v1646_v21, %v1650_v28  ;;  %v1803_v18 = vrot.slane %v1801_v57, 4  ;;  %v1806_v23 = vrot.slane %v1804_v17, 5  ;;  %v1829_v28 = vld [vmem:[#allocation2 + $0x18] sm:$0x1e] }
 0x2d4   : > { %3733 = vmatpush3.bf16.msra.mxu1 %v4032_v56  ;;  %v3326_v63 = vcombine.high %v1423_v32, %v1423_v32  ;;  %v3327_v22 = vcombine.low %v1424_v50, %v1424_v50  ;;  %v1827_v25 = vsel %vm4801_vm2, %v1822_v41, %v1826_v52  ;;  %v3328_v36 = vcombine.high %v1424_v50, %v1424_v50  ;;  %v1426_v56 = vld [vmem:[#allocation2 + $0x40] sm:$0x1f]  ;;  %v1828_v41 = vld [vmem:[#allocation2 + $0x10] sm:$0x1e] }
 0x2d5   : > { %2823 = vmatmul.mubr.bf16.gmra.mrb[20].mxu1 %v3414_v15  ;;  %3734 = vmatprep.subr.bf16.mxu1 %v4033_v10  ;;  %v1524_v26 = vshrl.u32 %v3325_v24, 16  ;;  %v1527_v27 = vshll.u32 %v3325_v24, 16  ;;  %v1807_v29 = vor.u32 %v1806_v23, %v1803_v18  ;;  %v1812_v38 = vrot.slane %v1810_v16, 5 }
 0x2d6   : > { %2830 = vmatprep.mubr.bf16.mxu1 %v3419_v33  ;;  %v1533_v31 = vshll.u32 %v3326_v63, 16  ;;  %v1538_v34 = vshrl.u32 %v3327_v22, 16  ;;  %v1541_v35 = vshll.u32 %v3327_v22, 16  ;;  %v3345_v43 = vcombine.low %v1585_v11, %v1585_v11 }
 0x2d7   : > { %v1526_v39 = vrot.slane %v1524_v26, 4  ;;  %v1529_v42 = vrot.slane %v1527_v27, 5  ;;  %v1808_v46 = vrot.slane %v1807_v29, 4  ;;  %v1547_v9 = vshll.u32 %v3328_v36, 16  ;;  %v1831_v29 = vld [vmem:[#allocation2 + $0x28] sm:$0x1e] }
 0x2d8   : > { %v1540_v13 = vrot.slane %v1538_v34, 4  ;;  %v1543_v53 = vrot.slane %v1541_v35, 5  ;;  %3735 = vmatpush3.bf16.msra.mxu1 %v4033_v10  ;;  %v1535_v44 = vrot.slane %v1533_v31, 5  ;;  %v3346_v19 = vcombine.high %v1585_v11, %v1585_v11  ;;  %v1830_v35 = vld [vmem:[#allocation2 + $0x20] sm:$0x1e] }
 0x2d9   : > { %v1530_v52 = vor.u32 %v1529_v42, %v1526_v39  ;;  %v3347_v47 = vcombine.low %v1586_v37, %v1586_v37  ;;  %3736 = vmatprep.subr.bf16.mxu1 %v4043_v5  ;;  %v1813_v51 = vsel %vm4801_vm2, %v1808_v46, %v1812_v38  ;;  %v3348_v30 = vcombine.high %v1586_v37, %v1586_v37  ;;  %v1832_v37 = vld [vmem:[#allocation2 + $0x30] sm:$0x1e] }
 0x2da   : > { %v1544_v49 = vor.u32 %v1543_v53, %v1540_v13  ;;  %v3355_v55 = vrot.slane %v3345_v43, 9  ;;  %v3428_v8 = vcombine.low %v1813_v51, %v1827_v25  ;;  %v1653_v59 = vrot.slane %v3346_v19, 5 }
 0x2db   : > { %v1531_v58 = vrot.slane %v1530_v52, 4  ;;  %v3356_v60 = vrot.slane %v3347_v47, 9  ;;  %v1549_v62 = vrot.slane %v1547_v9, 5  ;;  %v1657_v0 = vrot.slane %v3348_v30, 5  ;;  %v1833_v9 = vld [vmem:[#allocation2 + $0x38] sm:$0x1e] }
 0x2dc   : > { %v1545_v61 = vrot.slane %v1544_v49, 4  ;;  %3737 = vmatpush3.bf16.msra.mxu1 %v4043_v5  ;;  %v3329_v20 = vcombine.low %v1425_v45, %v1425_v45  ;;  %2903 = vmatprep.mubr.bf16.mxu0 %v3428_v8  ;;  %v3330_v6 = vcombine.high %v1425_v45, %v1425_v45  ;;  %v3331_v7 = vcombine.low %v1426_v56, %v1426_v56 }
 0x2dd   : > { %v1536_v2 = vsel %vm4801_vm2, %v1531_v58, %v1535_v44  ;;  %3738 = vmatprep.subr.bf16.mxu1 %v4044_v48  ;;  %v1658_v40 = vsel %vm5023_vm9, %v3356_v60, %v1657_v0  ;;  %2904 = vmatmul.mubr.bf16.gmra.mrb[36].mxu0 %v4042_v1  ;;  %v3332_v21 = vcombine.high %v1426_v56, %v1426_v56  ;;  %v1835_v60 = vld [vmem:[#allocation2 + $0x48] sm:$0x1e]  ;;  %v1834_v0 = vld [vmem:[#allocation2 + $0x40] sm:$0x1e] }
 0x2de   : > { %v1550_v32 = vsel %vm4801_vm2, %v1545_v61, %v1549_v62  ;;  %v1552_v3 = vshrl.u32 %v3329_v20, 16  ;;  %v1654_v50 = vsel %vm5023_vm9, %v3355_v55, %v1653_v59  ;;  %v1555_v14 = vshll.u32 %v3329_v20, 16 }
 0x2df   : > { %v3415_v10 = vcombine.low %v1536_v2, %v1550_v32  ;;  %v3420_v57 = vcombine.low %v1654_v50, %v1658_v40  ;;  %v1566_v15 = vshrl.u32 %v3331_v7, 16  ;;  %v1569_v33 = vshll.u32 %v3331_v7, 16 }
 0x2e0   : > { %v1554_v17 = vrot.slane %v1552_v3, 4  ;;  %3739 = vmatpush3.bf16.msra.mxu1 %v4044_v48  ;;  %v1557_v16 = vrot.slane %v1555_v14, 5  ;;  %v1561_v24 = vshll.u32 %v3330_v6, 16  ;;  %v3373_v18 = vcombine.low %v1828_v41, %v1828_v41 }
 0x2e1   : > { %2831 = vmatmul.mubr.bf16.gmra.mrb[24].mxu1 %v3415_v10  ;;  %v3374_v23 = vcombine.high %v1828_v41, %v1828_v41  ;;  %3740 = vmatprep.subr.bf16.mxu1 %v4053_v4  ;;  %v1568_v63 = vrot.slane %v1566_v15, 4  ;;  %v1571_v22 = vrot.slane %v1569_v33, 5  ;;  %v1575_v11 = vshll.u32 %v3332_v21, 16 }
 0x2e2   : > { %2838 = vmatprep.mubr.bf16.mxu1 %v3420_v57  ;;  %v3375_v25 = vcombine.low %v1829_v28, %v1829_v28  ;;  %v1558_v36 = vor.u32 %v1557_v16, %v1554_v17  ;;  %v3376_v26 = vcombine.high %v1829_v28, %v1829_v28  ;;  %v3389_v27 = vrot.slane %v3373_v18, 9 }
 0x2e3   : > { %v1878_v5 = vrot.slane %v3374_v23, 5  ;;  %v1572_v31 = vor.u32 %v1571_v22, %v1568_v63  ;;  %v1563_v39 = vrot.slane %v1561_v24, 5  ;;  %v1577_v46 = vrot.slane %v1575_v11, 5 }
 0x2e4   : > { %v3390_v34 = vrot.slane %v3375_v25, 9  ;;  %3741 = vmatpush3.bf16.msra.mxu1 %v4053_v4  ;;  %v1559_v38 = vrot.slane %v1558_v36, 4  ;;  %v1882_v42 = vrot.slane %v3376_v26, 5  ;;  %v3379_v13 = vcombine.low %v1831_v29, %v1831_v29 }
 0x2e5   : > { %v1573_v43 = vrot.slane %v1572_v31, 4  ;;  %v3380_v53 = vcombine.high %v1831_v29, %v1831_v29  ;;  %v1879_v52 = vsel %vm5023_vm9, %v3389_v27, %v1878_v5  ;;  %v3377_v44 = vcombine.low %v1830_v35, %v1830_v35 }
 0x2e6   : > { %v3381_v19 = vcombine.low %v1832_v37, %v1832_v37  ;;  %v1564_v47 = vsel %vm4801_vm2, %v1559_v38, %v1563_v39  ;;  %v1883_v45 = vsel %vm5023_vm9, %v3390_v34, %v1882_v42  ;;  %v3378_v51 = vcombine.high %v1830_v35, %v1830_v35 }
 0x2e7   : > { %v1578_v48 = vsel %vm4801_vm2, %v1573_v43, %v1577_v46  ;;  %v3382_v30 = vcombine.high %v1832_v37, %v1832_v37  ;;  %v3383_v55 = vcombine.low %v1833_v9, %v1833_v9  ;;  %v3384_v56 = vcombine.high %v1833_v9, %v1833_v9 }
 0x2e8   : > { %v3416_v49 = vcombine.low %v1564_v47, %v1578_v48  ;;  %v3429_v8 = vcombine.low %v1879_v52, %v1883_v45  ;;  %v3392_v58 = vrot.slane %v3379_v13, 9  ;;  %v1890_v59 = vrot.slane %v3380_v53, 5 }
 0x2e9   : > { %v3393_v61 = vrot.slane %v3381_v19, 9  ;;  %v1894_v62 = vrot.slane %v3382_v30, 5  ;;  %v3391_v1 = vrot.slane %v3377_v44, 9  ;;  %v1886_v54 = vrot.slane %v3378_v51, 5 }
 0x2ea   : > { %2839 = vmatmul.mubr.bf16.gmra.mrb[28].mxu1 %v3416_v49  ;;  %v3394_v20 = vrot.slane %v3383_v55, 9  ;;  %v1898_v2 = vrot.slane %v3384_v56, 5  ;;  %v3387_v6 = vcombine.low %v1835_v60, %v1835_v60  ;;  %v1891_v7 = vsel %vm5023_vm9, %v3392_v58, %v1890_v59 }
 0x2eb   : > { %3742 = vmatprep.mubr.bf16.mxu1 %v3429_v8  ;;  %v3385_v4 = vcombine.low %v1834_v0, %v1834_v0  ;;  %v3386_v32 = vcombine.high %v1834_v0, %v1834_v0  ;;  %v3388_v40 = vcombine.high %v1835_v60, %v1835_v60  ;;  %v1895_v21 = vsel %vm5023_vm9, %v3393_v61, %v1894_v62 }
 0x2ec   : > { %v1887_v3 = vsel %vm5023_vm9, %v3391_v1, %v1886_v54  ;;  %v1899_v10 = vsel %vm5023_vm9, %v3394_v20, %v1898_v2  ;;  %v3396_v50 = vrot.slane %v3387_v6, 9 }
 0x2ed   : > { %v3430_v41 = vcombine.low %v1887_v3, %v1891_v7  ;;  %v3431_v14 = vcombine.low %v1895_v21, %v1899_v10  ;;  %v3395_v28 = vrot.slane %v3385_v4, 9  ;;  %v1902_v57 = vrot.slane %v3386_v32, 5 }
 0x2ee   : > { %v1906_v17 = vrot.slane %v3388_v40, 5 }
 0x2ef   : > { %v1903_v15 = vsel %vm5023_vm9, %v3395_v28, %v1902_v57 }
 0x2f0   : > { %v1907_v33 = vsel %vm5023_vm9, %v3396_v50, %v1906_v17 }
 0x2f1   : > { %v3432_v16 = vcombine.low %v1903_v15, %v1907_v33 }
 0x2f2   : > { %3743 = vmatmul.mubr.bf16.vlgmr.msra.gmra.mrb[32].mxu1 %v3430_v41 }
 0x2f3   : > { %3746 = vmatprep.mubr.bf16.mxu1 %v3431_v14 }
 0x2fa   : > { %3747 = vmatmul.mubr.bf16.gmra.mrb[36].mxu1 %v3432_v16 }
 0x360   : > { %v3596_v24 = vpop.f32.mrb[8].mxu0 }
 0x361   : > { %v3597_v18 = vpop.f32.mrb[9].mxu0 }
 0x362   : > { %v3598_v23 = vadd.f32 %v3597_v18, %v3596_v24  ;;  %v3599_v63 = vpop.f32.mrb[10].mxu0 }
 0x363   : > { %v3600_v22 = vpop.f32.mrb[11].mxu0 }
 0x364   : > { %v3601_v11 = vadd.f32 %v3600_v22, %v3599_v63 }
 0x36b   : > { %v3556_v25 = vpop.f32.mrb[0].mxu1 }
 0x36c   : > { %v3557_v36 = vpop.f32.mrb[1].mxu1 }
 0x36d   : > { %v3558_v26 = vadd.f32 %v3557_v36, %v3556_v25  ;;  %v3559_v27 = vpop.f32.mrb[2].mxu1 }
 0x36e   : > { %v3560_v5 = vpop.f32.mrb[3].mxu1 }
 0x36f   : > { %v2752_v29 = vadd.f32 %v3598_v23, %v3558_v26  ;;  %v3561_v31 = vadd.f32 %v3560_v5, %v3559_v27 }
 0x371   : > { %v3602_v34 = vpop.f32.mrb[12].mxu0  ;;  %v2755_v35 = vadd.f32 %v3601_v11, %v3561_v31 }
 0x372   : > { %v3603_v37 = vpop.f32.mrb[13].mxu0 }
 0x373   : > { %v3604_v12 = vadd.f32 %v3603_v37, %v3602_v34  ;;  %v3605_v38 = vpop.f32.mrb[14].mxu0 }
 0x374   : > { %v3606_v39 = vpop.f32.mrb[15].mxu0 }
 0x375   : > { %v3607_v42 = vadd.f32 %v3606_v39, %v3605_v38  ;;  %v3562_v43 = vpop.f32.mrb[4].mxu1 }
 0x376   : > { %v3563_v46 = vpop.f32.mrb[5].mxu1 }
 0x377   : > { %v3564_v13 = vadd.f32 %v3563_v46, %v3562_v43  ;;  %v3565_v53 = vpop.f32.mrb[6].mxu1 }
 0x378   : > { %v3566_v9 = vpop.f32.mrb[7].mxu1 }
 0x379   : > { %v5207_v52 = vadd.f32 %v3604_v12, %v3564_v13  ;;  %v3567_v44 = vadd.f32 %v3566_v9, %v3565_v53  ;;  %v3608_v19 = vpop.f32.mrb[16].mxu0 }
 0x37a   : > { %v3609_v47 = vpop.f32.mrb[17].mxu0 }
 0x37b   : > { %v2763_v48 = vadd.f32 %v3607_v42, %v3567_v44  ;;  %v3610_v45 = vadd.f32 %v3609_v47, %v3608_v19  ;;  %v3611_v51 = vpop.f32.mrb[18].mxu0 }
 0x37c   : > { %v3612_v49 = vpop.f32.mrb[19].mxu0 }
 0x37d   : > { %v3613_v30 = vadd.f32 %v3612_v49, %v3611_v51 }
 0x380   : > { %v3568_v55 = vpop.f32.mrb[8].mxu1 }
 0x381   : > { %v3569_v56 = vpop.f32.mrb[9].mxu1 }
 0x382   : > { %v3570_v8 = vadd.f32 %v3569_v56, %v3568_v55  ;;  %v3571_v58 = vpop.f32.mrb[10].mxu1 }
 0x383   : > { %v3572_v59 = vpop.f32.mrb[11].mxu1  ;;  %v3614_v61 = vpop.f32.mrb[20].mxu0 }
 0x384   : > { %v5209_v60 = vadd.f32 %v3610_v45, %v3570_v8  ;;  %v3573_v62 = vadd.f32 %v3572_v59, %v3571_v58  ;;  %v3615_v0 = vpop.f32.mrb[21].mxu0 }
 0x385   : > { %v3616_v1 = vadd.f32 %v3615_v0, %v3614_v61  ;;  %v3617_v20 = vpop.f32.mrb[22].mxu0 }
 0x386   : > { %v5211_v54 = vadd.f32 %v3613_v30, %v3573_v62  ;;  %v3618_v2 = vpop.f32.mrb[23].mxu0 }
 0x387   : > { %v3619_v6 = vadd.f32 %v3618_v2, %v3617_v20 }
 0x388   : > { %v3574_v7 = vpop.f32.mrb[12].mxu1 }
 0x389   : > { %v3575_v4 = vpop.f32.mrb[13].mxu1 }
 0x38a   : > { %v3576_v32 = vadd.f32 %v3575_v4, %v3574_v7  ;;  %v3577_v40 = vpop.f32.mrb[14].mxu1 }
 0x38b   : > { %v3578_v21 = vpop.f32.mrb[15].mxu1 }
 0x38c   : > { %v2776_v3 = vadd.f32 %v3616_v1, %v3576_v32  ;;  %v3579_v41 = vadd.f32 %v3578_v21, %v3577_v40 }
 0x38e   : > { %v3676_v10 = vpop.f32.mrb[24].mxu0  ;;  %v2779_v50 = vadd.f32 %v3619_v6, %v3579_v41 }
 0x38f   : > { %v3677_v14 = vpop.f32.mrb[25].mxu0 }
 0x390   : > { %v3678_v28 = vadd.f32 %v3677_v14, %v3676_v10  ;;  %v3679_v57 = vpop.f32.mrb[26].mxu0 }
 0x391   : > { %v3680_v17 = vpop.f32.mrb[27].mxu0 }
 0x392   : > { %v3681_v15 = vadd.f32 %v3680_v17, %v3679_v57  ;;  %v3505_v17 = vld [vmem:[#allocation12] ss:$0 sm:$0xff] }
 0x396   : > { %v3682_v33 = vpop.f32.mrb[28].mxu0 }
 0x397   : > { %v3683_v16 = vpop.f32.mrb[29].mxu0 }
 0x398   : > { %v3684_v24 = vadd.f32 %v3683_v16, %v3682_v33  ;;  %v3685_v18 = vpop.f32.mrb[30].mxu0 }
 0x399   : > { %v3686_v23 = vpop.f32.mrb[31].mxu0 }
 0x39a   : > { %v3636_v63 = vpop.f32.mrb[16].mxu1  ;;  %v3687_v22 = vadd.f32 %v3686_v23, %v3685_v18 }
 0x39b   : > { %v3637_v11 = vpop.f32.mrb[17].mxu1 }
 0x39c   : > { %v3638_v25 = vadd.f32 %v3637_v11, %v3636_v63  ;;  %v3639_v36 = vpop.f32.mrb[18].mxu1 }
 0x39d   : > { %v3640_v26 = vpop.f32.mrb[19].mxu1 }
 0x39e   : > { %v2817_v27 = vadd.f32 %v3638_v25, %v2752_v29  ;;  %v3641_v5 = vadd.f32 %v3640_v26, %v3639_v36 }
 0x3a0   : > { %v2820_v31 = vadd.f32 %v3641_v5, %v2755_v35  ;;  %v2882_v34 = vadd.f32 %v3678_v28, %v2817_v27 }
 0x3a2   : > { %v2885_v37 = vadd.f32 %v3681_v15, %v2820_v31 }
 0x3a4   : > { %v3688_v12 = vpop.f32.mrb[32].mxu0 }
 0x3a5   : > { %v3689_v38 = vpop.f32.mrb[33].mxu0 }
 0x3a6   : > { %v3690_v39 = vadd.f32 %v3689_v38, %v3688_v12  ;;  %v3691_v42 = vpop.f32.mrb[34].mxu0 }
 0x3a7   : > { %v3692_v46 = vpop.f32.mrb[35].mxu0 }
 0x3a8   : > { %v3642_v43 = vpop.f32.mrb[20].mxu1  ;;  %v3693_v53 = vadd.f32 %v3692_v46, %v3691_v42 }
 0x3a9   : > { %v3643_v13 = vpop.f32.mrb[21].mxu1 }
 0x3aa   : > { %v3644_v9 = vadd.f32 %v3643_v13, %v3642_v43  ;;  %v3645_v44 = vpop.f32.mrb[22].mxu1  ;;  %v3532_v13 = vld [vmem:[%s4766_s19 + $0x18] sm:$0xff]  }
 0x3ab   : > { %v3646_v19 = vpop.f32.mrb[23].mxu1 }
 0x3ac   : > { %v2825_v47 = vadd.f32 %v3644_v9, %v5207_v52  ;;  %v3647_v45 = vadd.f32 %v3646_v19, %v3645_v44 }
 0x3ae   : > { %v2828_v51 = vadd.f32 %v3647_v45, %v2763_v48  ;;  %v2890_v29 = vadd.f32 %v3684_v24, %v2825_v47  ;;  %v3506_v24 = vld [vmem:[#allocation14] ss:$0 sm:$0xff]  ;;  %v3531_v47 = vld [vmem:[%s4766_s19 + $0x10] sm:$0xff]  }
 0x3b0   : > { %v2893_v49 = vadd.f32 %v3687_v22, %v2828_v51  ;;  %v3694_v35 = vpop.f32.mrb[36].mxu0 }
 0x3b1   : > { %v3695_v30 = vpop.f32.mrb[37].mxu0 }
 0x3b2   : > { %v3696_v55 = vadd.f32 %v3695_v30, %v3694_v35  ;;  %v3697_v56 = vpop.f32.mrb[38].mxu0  ;;  %v3528_v30 = vunpack.c.l.bf16 %v3532_v13 }
 0x3b3   : > { %v3698_v58 = vpop.f32.mrb[39].mxu0 }
 0x3b4   : > { %v3648_v8 = vpop.f32.mrb[24].mxu1  ;;  %v3699_v61 = vadd.f32 %v3698_v58, %v3697_v56 }
 0x3b5   : > { %v3649_v59 = vpop.f32.mrb[25].mxu1 }
 0x3b6   : > { %v3650_v62 = vadd.f32 %v3649_v59, %v3648_v8  ;;  %v3651_v0 = vpop.f32.mrb[26].mxu1  ;;  %v3524_v59 = vunpack.c.l.bf16 %v3531_v47 }
 0x3b7   : > { %v3652_v1 = vpop.f32.mrb[27].mxu1 }
 0x3b8   : > { %v2833_v20 = vadd.f32 %v3650_v62, %v5209_v60  ;;  %v3653_v2 = vadd.f32 %v3652_v1, %v3651_v0  ;;  %v3530_v60 = vld [vmem:[%s4766_s19 + $0x8] sm:$0xff]   ;;  %v3529_v1 = vunpack.c.h.bf16 %v3532_v13 }
 0x3b9   : > { %v3520_v22 = vunpack.c.l.bf16 %v3530_v60  ;;  %v3521_v5 = vunpack.c.h.bf16 %v3530_v60 }
 0x3ba   : > { %v2836_v52 = vadd.f32 %v3653_v2, %v5211_v54  ;;  %v2898_v48 = vadd.f32 %v3690_v39, %v2833_v20  ;;  %v3515_v54 = vld [vmem:[%s4766_s19] sm:$0xff]  }
 0x3bb   : > { %v3516_v36 = vunpack.c.l.bf16 %v3515_v54  ;;  %v3517_v38 = vunpack.c.h.bf16 %v3515_v54 }
 0x3bc   : > { %v2901_v6 = vadd.f32 %v3693_v53, %v2836_v52  ;;  %v3525_v52 = vunpack.c.h.bf16 %v3531_v47 }
 0x3bd   : > { %v3654_v7 = vpop.f32.mrb[28].mxu1 }
 0x3be   : > { %v3655_v4 = vpop.f32.mrb[29].mxu1 }
 0x3bf   : > { %v3656_v32 = vadd.f32 %v3655_v4, %v3654_v7  ;;  %v3657_v40 = vpop.f32.mrb[30].mxu1 }
 0x3c0   : > { %v3658_v21 = vpop.f32.mrb[31].mxu1 }
 0x3c1   : > { %v2841_v41 = vadd.f32 %v3656_v32, %v2776_v3  ;;  %v3659_v10 = vadd.f32 %v3658_v21, %v3657_v40 }
 0x3c3   : > { %v2844_v14 = vadd.f32 %v3659_v10, %v2779_v50  ;;  %v2906_v28 = vadd.f32 %v3696_v55, %v2841_v41 }
 0x3c5   : > { %v3744_v57 = vpop.f32.mrb[32].mxu1  ;;  %v2909_v15 = vadd.f32 %v3699_v61, %v2844_v14 }
 0x3c6   : > { %v2955_v33 = vadd.f32 %v3744_v57, %v2890_v29  ;;  %v2946_v16 = vpop.f32.mrb[33].mxu1 }
 0x3c7   : > { %v2947_v18 = vadd.f32 %v2946_v16, %v2882_v34  ;;  %v3745_v23 = vpop.f32.mrb[34].mxu1 }
 0x3c8   : > { %v2986_v63 = vmul.f32 %v3505_v17, %v2955_v33  ;;  %v2958_v11 = vadd.f32 %v3745_v23, %v2893_v49  ;;  %v2949_v25 = vpop.f32.mrb[35].mxu1 }
 0x3c9   : > { %v2984_v3 = vmul.f32 %v3505_v17, %v2947_v18  ;;  %v2950_v50 = vadd.f32 %v2949_v25, %v2885_v37 }
 0x3ca   : > { %v3001_v26 = vadd.f32 %v3506_v24, %v2986_v63  ;;  %v2987_v27 = vmul.f32 %v3505_v17, %v2958_v11 }
 0x3cb   : > { %v2999_v31 = vadd.f32 %v3506_v24, %v2984_v3  ;;  %v2985_v12 = vmul.f32 %v3505_v17, %v2950_v50 }
 0x3cc   : > { %v3025_v39 = vadd.f32 %v3520_v22, %v3001_v26  ;;  %v3002_v42 = vadd.f32 %v3506_v24, %v2987_v27 }
 0x3cd   : > { %v3023_v34 = vadd.f32 %v3516_v36, %v2999_v31  ;;  %v3000_v43 = vadd.f32 %v3506_v24, %v2985_v12  ;;  %v3748_v46 = vpop.f32.mrb[36].mxu1 }
 0x3ce   : > { %v3033_v53 = vmax.f32 %v3025_v39, 0.0  ;;  %v3026_v9 = vadd.f32 %v3521_v5, %v3002_v42  ;;  %v2971_v44 = vadd.f32 %v3748_v46, %v2906_v28  ;;  %v2962_v19 = vpop.f32.mrb[37].mxu1 }
 0x3cf   : > { %v3031_v37 = vmax.f32 %v3023_v34, 0.0  ;;  %v3024_v45 = vadd.f32 %v3517_v38, %v3000_v43  ;;  %v2963_v51 = vadd.f32 %v2962_v19, %v2898_v48  ;;  %v3749_v29 = vpop.f32.mrb[38].mxu1 }
 0x3d0   : > { %3041 = vst.msk [vmem:[%s5221_s22 + $0x10] sm:$0xff] %vm812_vm4, %v3033_v53  ;;  %v3034_v49 = vmax.f32 %v3026_v9, 0.0  ;;  %v2990_v35 = vmul.f32 %v3505_v17, %v2971_v44  ;;  %v2974_v55 = vadd.f32 %v3749_v29, %v2909_v15  ;;  %v2965_v56 = vpop.f32.mrb[39].mxu1 }
 0x3d1   : > { %3039 = vst.msk [vmem:[%s5221_s22] sm:$0xff] %vm812_vm4, %v3031_v37  ;;  %v3032_v8 = vmax.f32 %v3024_v45, 0.0  ;;  %v2988_v58 = vmul.f32 %v3505_v17, %v2963_v51  ;;  %v2966_v61 = vadd.f32 %v2965_v56, %v2901_v6 }
 0x3d2   : > { %3042 = vst.msk [vmem:[%s5221_s22 + $0x18] sm:$0xff] %vm812_vm4, %v3034_v49  ;;  %v3005_v62 = vadd.f32 %v3506_v24, %v2990_v35  ;;  %v2991_v0 = vmul.f32 %v3505_v17, %v2974_v55 }
 0x3d3   : > { %3040 = vst.msk [vmem:[%s5221_s22 + $0x8] sm:$0xff] %vm812_vm4, %v3032_v8  ;;  %v3003_v20 = vadd.f32 %v3506_v24, %v2988_v58  ;;  %v2989_v2 = vmul.f32 %v3505_v17, %v2966_v61 }
 0x3d4   : > { %v3029_v48 = vadd.f32 %v3528_v30, %v3005_v62  ;;  %v3006_v7 = vadd.f32 %v3506_v24, %v2991_v0 }
 0x3d5   : > { %v3027_v4 = vadd.f32 %v3524_v59, %v3003_v20  ;;  %v3004_v6 = vadd.f32 %v3506_v24, %v2989_v2 }
 0x3d6   : > { %v3037_v32 = vmax.f32 %v3029_v48, 0.0  ;;  %v3030_v40 = vadd.f32 %v3529_v1, %v3006_v7 }
 0x3d7   : > { %v3035_v21 = vmax.f32 %v3027_v4, 0.0  ;;  %v3028_v41 = vadd.f32 %v3525_v52, %v3004_v6 }
 0x3d8   : > { %3045 = vst.msk [vmem:[%s5221_s22 + $0x30] sm:$0xff] %vm812_vm4, %v3037_v32  ;;  %v3038_v10 = vmax.f32 %v3030_v40, 0.0 }
 0x3d9   : > { %3043 = vst.msk [vmem:[%s5221_s22 + $0x20] sm:$0xff] %vm812_vm4, %v3035_v21  ;;  %v3036_v14 = vmax.f32 %v3028_v41, 0.0 }
 0x3da   : > { %3046 = vst.msk [vmem:[%s5221_s22 + $0x38] sm:$0xff] %vm812_vm4, %v3038_v10 }
 0x3db   : > { %3044 = vst.msk [vmem:[%s5221_s22 + $0x28] sm:$0xff] %vm812_vm4, %v3036_v14 }
 0x3dc   : > { %4307 = shalt.err (!%p4304_p8)
}
 0x3dd   : > { %s4308_s19 = scalar_lea.hbm %s5238_s23, 1024  ;;  %s4312_s26 = scalar_lea.hbm %s5299_s8, 2048 }
 0x3de   : > { %p4309_p11 = scmp.ne.s32.totalorder %s5238_s23, %s4308_s19  ;;  %p4313_p1 = scmp.lt.u32.totalorder %s5238_s23, %s5299_s8 }
 0x3df   : > { %p4314_p13 = scmp.lt.u32.totalorder %s4312_s26, %s4308_s19  ;;  %p4316_p5 = scmp.lt.u32.totalorder %s4308_s19, %s5238_s23 }
 0x3e0   : > { %p4310_p3 = pnand %p4309_p11, %p5344_p2 }
 0x3e1   : > { %p4315_p0 = por %p4314_p13, %p4313_p1 }
 0x3e2   : > { %p4311_p12 = pneg %p4310_p3 }
 0x3e3   : > { %p4317_p4 = por %p4316_p5, %p4315_p0 }
 0x3e5   : > { %p4318_p10 = pnand %p4317_p4, %p4311_p12 }
 0x3e7   : > { %4321 = shalt.err (!%p4318_p10)
}
 0x3e8   : > { %s4395_s22 = smov 128  }
 0x3e9   : > { %3782 = dma.vmem_to_hbm [thread:$0]  (%p5344_p2), %s5242_s21, 1024, %s5238_s23, %s3048_s11, %s4395_s22, %s4395_s22, %s4390_s1  }
 0x3ea PF: > { %s3076_s3 = sand.u32 1, %s4364_s27   ;;  %p5345_p6 = scmp.ne.s32.totalorder %s5323_s17, 0 }
 0x3eb   : > { %p5346_p7 = scmp.ge.s32.totalorder %s4376_s30, 2  ;;  %s3077_s20 = scalar_lea.sflag [#allocation5], %s3076_s3 }
 0x3ed   : > { %p3811_p9 = pnand %p5346_p7, %p5345_p6 }
 0x3ef   : > { %4359 = dma.done.wait (!%p3811_p9), %s3077_s20, 1024  }
 0x3f0   : > { %4361 = vsyncadd (!%p3811_p9), %s3077_s20, 4294966272  ;;  %p27_p8 = scmp.ge.s32.totalorder %s4625_s15, 4   ;;  %s5347_s27 = smov %s4368_s28 }
 0x3f1   : > { %s5348_s28 = smov %s4372_s29  ;;  %s5349_s29 = smov %s4636_s14 }
 0x3f2   : > { %s5350_s30 = smov %s4625_s15  ;;  %29 = sbr.rel (!%p27_p8) target bundleno = 16 (0x10), region = 138 }
 0x3f9   :  { %3082 = vsyncpa [#allocation4], 1 }
 0x3fa   :  { %3084 = vsyncpa [#allocation4 + $0x1], 1 }
 0x3fb   :  { %3085 = vsyncpa [#allocation7], 1 }
 0x3fc   :  { %3086 = vsyncpa [#allocation10], 1 }
 0x3fd   :  { %3087 = vsyncpa [#allocation13], 1 }
 0x3fe   :  { %3088 = vsyncpa [#allocation16], 1 }
 0x3ff   :  { %3090 = vsyncpa [#allocation16 + $0x1], 1 }
 0x400   :  { %3091 = vsyncpa [#allocation5], 1 }
 0x401   :  { %3093 = vsyncpa [#allocation5 + $0x1], 1 }

</bundles_post_ra>
